<compile_context>
chip_gen: v5e
topology: v5e:2x2
jax: 0.10.0
libtpu: 0.0.40
codegen_flags: <defaults>
</compile_context>

<pallas_src>
import functools

import jax
import jax.numpy as jnp
from jax.experimental import pallas as pl
from jax.experimental.pallas import tpu as pltpu

_LANE = 128   # lane width / MXU-friendly feature padding
_TM = 128     # destination-row tile


def _round_up(x, m):
    return (x + m - 1) // m * m


def _pad2(a, rows, cols):
    return jnp.pad(a, ((0, rows - a.shape[0]), (0, cols - a.shape[1])))


def _pick_src_tile(n_pad):
    # Largest MXU-friendly source tile that divides the padded node count.
    for tk in (512, 256, 128):
        if n_pad % tk == 0:
            return tk
    return n_pad


# --------------------------------------------------------------------------
# Kernel 1: per-node feature transform (all relations folded into one matmul)
# --------------------------------------------------------------------------
def _feat_kernel(x_ref, wrel_ref, wloop_ref, b_ref, xw_ref, hself_ref):
    x = x_ref[...]
    # One wide matmul over the concatenated relation weights.
    xw = jnp.dot(x, wrel_ref[...], preferred_element_type=jnp.float32)
    xw_ref[...] = xw.astype(jnp.bfloat16)          # streamed operand -> bf16
    # Self-loop term + bias, kept in f32 for exact accumulation.
    hself_ref[...] = (
        jnp.dot(x, wloop_ref[...], preferred_element_type=jnp.float32)
        + b_ref[...]
    )


def _feat_transform(x_pad, w_rel_all, w_loop_pad, b_pad, *, tm):
    n_pad, d_in_pad = x_pad.shape
    rd_out = w_rel_all.shape[1]
    d_out_pad = w_loop_pad.shape[1]
    return pl.pallas_call(
        _feat_kernel,
        out_shape=(
            jax.ShapeDtypeStruct((n_pad, rd_out), jnp.bfloat16),
            jax.ShapeDtypeStruct((n_pad, d_out_pad), jnp.float32),
        ),
        grid_spec=pltpu.PrefetchScalarGridSpec(
            num_scalar_prefetch=0,
            grid=(n_pad // tm,),
            in_specs=[
                pl.BlockSpec((tm, d_in_pad), lambda i: (i, 0)),         # X tile
                pl.BlockSpec((d_in_pad, rd_out), lambda i: (0, 0)),     # concat(W_r)
                pl.BlockSpec((d_in_pad, d_out_pad), lambda i: (0, 0)),  # W_loop
                pl.BlockSpec((1, d_out_pad), lambda i: (0, 0)),         # bias
            ],
            out_specs=[
                pl.BlockSpec((tm, rd_out), lambda i: (i, 0)),           # XW_all (bf16)
                pl.BlockSpec((tm, d_out_pad), lambda i: (i, 0)),        # self-loop (f32)
            ],
        ),
        compiler_params=pltpu.CompilerParams(
            dimension_semantics=("parallel",)),
    )(x_pad, w_rel_all, w_loop_pad, b_pad)


# --------------------------------------------------------------------------
# Kernel 2: relational aggregation, accumulating directly into the output ref
# --------------------------------------------------------------------------
def _agg_kernel(a_ref, xw_ref, hself_ref, o_ref, *, apply_relu):
    r = pl.program_id(1)
    s = pl.program_id(2)

    # First reduction step: initialize with self-loop + bias.
    @pl.when(jnp.logical_and(r == 0, s == 0))
    def _():
        o_ref[...] = hself_ref[...]

    # bf16 x bf16 MXU matmul, f32 accumulation into the resident output block.
    o_ref[...] += jnp.dot(a_ref[0], xw_ref[...],
                          preferred_element_type=jnp.float32)

    if apply_relu:
        last = jnp.logical_and(r == pl.num_programs(1) - 1,
                               s == pl.num_programs(2) - 1)

        @pl.when(last)
        def _():
            o_ref[...] = jnp.maximum(o_ref[...], 0.0)


def _aggregate(adj_bf16, xw_bf16, hself, *, tm, apply_relu):
    num_rels, n_pad, _ = adj_bf16.shape
    d_out_pad = hself.shape[1]
    n_tiles = n_pad // tm
    tk = _pick_src_tile(n_pad)
    k_tiles = n_pad // tk

    flops = 2 * num_rels * n_pad * n_pad * d_out_pad
    bytes_accessed = (num_rels * n_pad * n_pad * 2                  # A (bf16)
                      + n_tiles * num_rels * n_pad * d_out_pad * 2  # XW refetch per dst tile
                      + 2 * n_pad * d_out_pad * 4)                  # hself + out
    kernel = functools.partial(_agg_kernel, apply_relu=apply_relu)
    return pl.pallas_call(
        kernel,
        out_shape=jax.ShapeDtypeStruct((n_pad, d_out_pad), jnp.float32),
        grid_spec=pltpu.PrefetchScalarGridSpec(
            num_scalar_prefetch=0,
            # dst-tile axis parallel (megacore); relation + source are the
            # reduction axes (last), so the output block stays resident.
            grid=(n_tiles, num_rels, k_tiles),
            in_specs=[
                pl.BlockSpec((1, tm, tk), lambda i, r, s: (r, i, s)),      # A[r] tile
                pl.BlockSpec((tk, d_out_pad), lambda i, r, s: (s, r)),     # XW[:, r] tile
                pl.BlockSpec((tm, d_out_pad), lambda i, r, s: (i, 0)),     # self-loop
            ],
            out_specs=pl.BlockSpec((tm, d_out_pad), lambda i, r, s: (i, 0)),
        ),
        compiler_params=pltpu.CompilerParams(
            dimension_semantics=("parallel", "arbitrary", "arbitrary"),
            vmem_limit_bytes=48 * 1024 * 1024),  # headroom on v7x's 64 MiB
        cost_estimate=pl.CostEstimate(
            flops=flops, transcendentals=0, bytes_accessed=bytes_accessed),
    )(adj_bf16, xw_bf16, hself)


# --------------------------------------------------------------------------
# Layer / forward wrappers
# --------------------------------------------------------------------------
def rgcn_layer(x_pad, adj_bf16, w, w_loop, b, *, apply_relu, tm=_TM):
    """x_pad: (N_pad, d_in_pad) f32; adj_bf16: (R, N_pad, N_pad) bf16."""
    num_rels, d_in, d_out = w.shape
    d_in_pad = x_pad.shape[1]
    d_out_pad = _round_up(d_out, _LANE)

    w_pad = jnp.pad(w, ((0, 0), (0, d_in_pad - d_in), (0, d_out_pad - d_out)))
    w_rel_all = jnp.transpose(w_pad, (1, 0, 2)).reshape(d_in_pad,
                                                        num_rels * d_out_pad)
    w_loop_pad = _pad2(w_loop, d_in_pad, d_out_pad)
    b_pad = _pad2(b, 1, d_out_pad)

    xw_bf16, hself = _feat_transform(x_pad, w_rel_all, w_loop_pad, b_pad, tm=tm)
    return _aggregate(adj_bf16, xw_bf16, hself, tm=tm, apply_relu=apply_relu)


@functools.partial(jax.jit, static_argnames=("tm",))
def rgcn_forward(feat, adj, params, *, tm=_TM):
    n, d_in = feat.shape
    out_dim = params["w2"].shape[2]

    n_pad = _round_up(n, tm)
    d_in_pad = _round_up(d_in, _LANE)

    x_pad = _pad2(feat, n_pad, d_in_pad)
    # Edge counts are small integers -> exact in bf16; halves the dominant HBM traffic.
    adj_pad = jnp.pad(adj, ((0, 0), (0, n_pad - n), (0, n_pad - n))).astype(jnp.bfloat16)

    h = rgcn_layer(x_pad, adj_pad, params["w1"], params["w1_loop"], params["b1"],
                   apply_relu=True, tm=tm)
    out = rgcn_layer(h, adj_pad, params["w2"], params["w2_loop"], params["b2"],
                     apply_relu=False, tm=tm)
    return out[:n, :out_dim]


# --------------------------------------------------------------------------
# Pure-JAX reference (same bf16 casting points as the kernel)
# --------------------------------------------------------------------------
def _ref_layer(x, adj, w, w_loop, b, apply_relu):
    xw = jnp.einsum("nd,rde->rne", x, w,
                    preferred_element_type=jnp.float32).astype(jnp.bfloat16)
    agg = jnp.einsum("rvu,rue->ve", adj.astype(jnp.bfloat16), xw,
                     preferred_element_type=jnp.float32)
    out = agg + x @ w_loop + b
    return jnp.maximum(out, 0.0) if apply_relu else out


def _ref_forward(feat, adj, params):
    h = _ref_layer(feat, adj, params["w1"], params["w1_loop"], params["b1"], True)
    return _ref_layer(h, adj, params["w2"], params["w2_loop"], params["b2"], False)


if __name__ == "__main__":
    # Small synthetic graph / model dims (consistent with a 2-layer RGCN).
    N = 16          # nodes
    E = 64          # edges
    IN_DIM = 8
    HIDDEN_DIM = 32
    OUT_DIM = 16
    NUM_RELS = 4

    key = jax.random.PRNGKey(0)
    k_feat, k_src, k_dst, k_et, k_w1, k_w1l, k_w2, k_w2l = jax.random.split(key, 8)

    feat = jax.random.normal(k_feat, (N, IN_DIM), dtype=jnp.float32)

    # Deterministic random typed graph -> dense per-relation adjacency.
    src = jax.random.randint(k_src, (E,), 0, N)
    dst = jax.random.randint(k_dst, (E,), 0, N)
    etypes = jax.random.randint(k_et, (E,), 0, NUM_RELS)
    adj = jnp.zeros((NUM_RELS, N, N), dtype=jnp.float32)
    adj = adj.at[etypes, dst, src].add(1.0)   # A[r, v, u] = #edges u->v of type r

    params = {
        "w1": 0.1 * jax.random.normal(k_w1, (NUM_RELS, IN_DIM, HIDDEN_DIM), jnp.float32),
        "w1_loop": 0.1 * jax.random.normal(k_w1l, (IN_DIM, HIDDEN_DIM), jnp.float32),
        "b1": jnp.zeros((1, HIDDEN_DIM), jnp.float32),
        "w2": 0.1 * jax.random.normal(k_w2, (NUM_RELS, HIDDEN_DIM, OUT_DIM), jnp.float32),
        "w2_loop": 0.1 * jax.random.normal(k_w2l, (HIDDEN_DIM, OUT_DIM), jnp.float32),
        "b2": jnp.zeros((1, OUT_DIM), jnp.float32),
    }

    out = jax.block_until_ready(rgcn_forward(feat, adj, params))
    ref = jax.block_until_ready(_ref_forward(feat, adj, params))

    assert out.shape == (N, OUT_DIM)
    assert jnp.allclose(out, ref, atol=1e-2, rtol=1e-2), float(jnp.max(jnp.abs(out - ref)))
    print("KERNEL_OK")
</pallas_src>

<mosaic_0001>
module attributes {stable_mosaic.version = 11 : i64} {
  func.func @_feat_kernel(%arg0: i32, %arg1: memref<128x128xf32, #tpu.memory_space<vmem>>, %arg2: memref<128x512xf32, #tpu.memory_space<vmem>>, %arg3: memref<128x128xf32, #tpu.memory_space<vmem>>, %arg4: memref<1x128xf32, #tpu.memory_space<vmem>>, %arg5: memref<128x512xbf16, #tpu.memory_space<vmem>>, %arg6: memref<128x128xf32, #tpu.memory_space<vmem>>) attributes {dimension_semantics = [#tpu.dimension_semantics<parallel>], iteration_bounds = array<i64: 1>, scalar_prefetch = 0 : i64, scratch_operands = 0 : i64, tpu.core_type = #tpu.core_type<tc>, window_params = [{transform_indices = @transform_0, window_bounds = array<i64: 128, 128>}, {pipeline_mode = #tpu.pipeline_mode<synchronous>, transform_indices = @transform_1, window_bounds = array<i64: 128, 512>}, {pipeline_mode = #tpu.pipeline_mode<synchronous>, transform_indices = @transform_2, window_bounds = array<i64: 128, 128>}, {pipeline_mode = #tpu.pipeline_mode<synchronous>, transform_indices = @transform_3, window_bounds = array<i64: 1, 128>}, {transform_indices = @transform_4, window_bounds = array<i64: 128, 512>}, {transform_indices = @transform_5, window_bounds = array<i64: 128, 128>}]} {
    %c0 = arith.constant 0 : index
    %c0_0 = arith.constant 0 : index
    %0 = vector.load %arg1[%c0, %c0_0] : memref<128x128xf32, #tpu.memory_space<vmem>>, vector<128x128xf32>
    %c0_1 = arith.constant 0 : index
    %c0_2 = arith.constant 0 : index
    %1 = vector.load %arg2[%c0_1, %c0_2] : memref<128x512xf32, #tpu.memory_space<vmem>>, vector<128x512xf32>
    %cst = arith.constant dense<0.000000e+00> : vector<128x512xf32>
    %2 = tpu.matmul %0, %1, %cst {dimension_numbers = #tpu.dot_dimension_numbers<[1], [0], [0], [1], [0, 0, 1, 1], [], []>} : vector<128x128xf32>, vector<128x512xf32>, vector<128x512xf32> -> vector<128x512xf32>
    %3 = arith.truncf %2 : vector<128x512xf32> to vector<128x512xbf16>
    %c0_3 = arith.constant 0 : index
    %c0_4 = arith.constant 0 : index
    %4 = vector.load %arg5[%c0_3, %c0_4] : memref<128x512xbf16, #tpu.memory_space<vmem>>, vector<128x512xbf16>
    tpu.vector_store %arg5[%c0_3, %c0_4], %3 {strides = array<i32>} : memref<128x512xbf16, #tpu.memory_space<vmem>>, vector<128x512xbf16>,
    %c0_5 = arith.constant 0 : index
    %c0_6 = arith.constant 0 : index
    %5 = vector.load %arg3[%c0_5, %c0_6] : memref<128x128xf32, #tpu.memory_space<vmem>>, vector<128x128xf32>
    %cst_7 = arith.constant dense<0.000000e+00> : vector<128x128xf32>
    %6 = tpu.matmul %0, %5, %cst_7 {dimension_numbers = #tpu.dot_dimension_numbers<[1], [0], [0], [1], [0, 0, 1, 1], [], []>} : vector<128x128xf32>, vector<128x128xf32>, vector<128x128xf32> -> vector<128x128xf32>
    %c0_8 = arith.constant 0 : index
    %c0_9 = arith.constant 0 : index
    %7 = vector.load %arg4[%c0_8, %c0_9] : memref<1x128xf32, #tpu.memory_space<vmem>>, vector<1x128xf32>
    %8 = vector.broadcast %7 : vector<1x128xf32> to vector<128x128xf32>
    %9 = arith.addf %6, %8 : vector<128x128xf32>
    %c0_10 = arith.constant 0 : index
    %c0_11 = arith.constant 0 : index
    %10 = vector.load %arg6[%c0_10, %c0_11] : memref<128x128xf32, #tpu.memory_space<vmem>>, vector<128x128xf32>
    tpu.vector_store %arg6[%c0_10, %c0_11], %9 {strides = array<i32>} : memref<128x128xf32, #tpu.memory_space<vmem>>, vector<128x128xf32>,
    return
  }
  func.func @transform_0(%arg0: i32) -> (i32, i32) {
    %c0_i32 = arith.constant 0 : i32
    %c0_i32_0 = arith.constant 0 : i32
    return %arg0, %c0_i32 : i32, i32
  }
  func.func @transform_1(%arg0: i32) -> (i32, i32) {
    %c0_i32 = arith.constant 0 : i32
    %c0_i32_0 = arith.constant 0 : i32
    %c0_i32_1 = arith.constant 0 : i32
    return %c0_i32, %c0_i32_0 : i32, i32
  }
  func.func @transform_2(%arg0: i32) -> (i32, i32) {
    %c0_i32 = arith.constant 0 : i32
    %c0_i32_0 = arith.constant 0 : i32
    %c0_i32_1 = arith.constant 0 : i32
    return %c0_i32, %c0_i32_0 : i32, i32
  }
  func.func @transform_3(%arg0: i32) -> (i32, i32) {
    %c0_i32 = arith.constant 0 : i32
    %c0_i32_0 = arith.constant 0 : i32
    %c0_i32_1 = arith.constant 0 : i32
    return %c0_i32, %c0_i32_0 : i32, i32
  }
  func.func @transform_4(%arg0: i32) -> (i32, i32) {
    %c0_i32 = arith.constant 0 : i32
    %c0_i32_0 = arith.constant 0 : i32
    return %arg0, %c0_i32 : i32, i32
  }
  func.func @transform_5(%arg0: i32) -> (i32, i32) {
    %c0_i32 = arith.constant 0 : i32
    %c0_i32_0 = arith.constant 0 : i32
    return %arg0, %c0_i32 : i32, i32
  }
}

module attributes {stable_mosaic.version = 11 : i64} {
  func.func @_agg_kernel(%arg0: i32, %arg1: i32, %arg2: i32, %arg3: memref<1x128x128xbf16, #tpu.memory_space<vmem>>, %arg4: memref<128x128xbf16, #tpu.memory_space<vmem>>, %arg5: memref<128x128xf32, #tpu.memory_space<vmem>>, %arg6: memref<128x128xf32, #tpu.memory_space<vmem>>) attributes {dimension_semantics = [#tpu.dimension_semantics<parallel>, #tpu.dimension_semantics<arbitrary>, #tpu.dimension_semantics<arbitrary>], iteration_bounds = array<i64: 1, 4, 1>, scalar_prefetch = 0 : i64, scratch_operands = 0 : i64, tpu.core_type = #tpu.core_type<tc>, window_params = [{transform_indices = @transform_0, window_bounds = array<i64: 1, 128, 128>}, {transform_indices = @transform_1, window_bounds = array<i64: 128, 128>}, {transform_indices = @transform_2, window_bounds = array<i64: 128, 128>}, {transform_indices = @transform_3, window_bounds = array<i64: 128, 128>}]} {
    %c0_i32 = arith.constant 0 : i32
    %0 = arith.cmpi eq, %arg1, %c0_i32 : i32
    %c0_i32_0 = arith.constant 0 : i32
    %1 = arith.cmpi eq, %arg2, %c0_i32_0 : i32
    %2 = arith.andi %0, %1 : i1
    %3 = arith.extui %2 : i1 to i32
    %c0_i32_1 = arith.constant 0 : i32
    %4 = arith.cmpi ne, %3, %c0_i32_1 : i32
    scf.if %4 {
      %c0_12 = arith.constant 0 : index
      %c0_13 = arith.constant 0 : index
      %17 = vector.load %arg5[%c0_12, %c0_13] : memref<128x128xf32, #tpu.memory_space<vmem>>, vector<128x128xf32>
      %c0_14 = arith.constant 0 : index
      %c0_15 = arith.constant 0 : index
      %18 = vector.load %arg6[%c0_14, %c0_15] : memref<128x128xf32, #tpu.memory_space<vmem>>, vector<128x128xf32>
      tpu.vector_store %arg6[%c0_14, %c0_15], %17 {strides = array<i32>} : memref<128x128xf32, #tpu.memory_space<vmem>>, vector<128x128xf32>,
    } else {
    }
    %c0 = arith.constant 0 : index
    %c0_2 = arith.constant 0 : index
    %5 = vector.load %arg6[%c0, %c0_2] : memref<128x128xf32, #tpu.memory_space<vmem>>, vector<128x128xf32>
    %c0_3 = arith.constant 0 : index
    %c0_4 = arith.constant 0 : index
    %c0_5 = arith.constant 0 : index
    %6 = vector.load %arg3[%c0_3, %c0_4, %c0_5] : memref<1x128x128xbf16, #tpu.memory_space<vmem>>, vector<1x128x128xbf16>
    %7 = vector.shape_cast %6 : vector<1x128x128xbf16> to vector<128x128xbf16>
    %c0_6 = arith.constant 0 : index
    %c0_7 = arith.constant 0 : index
    %8 = vector.load %arg4[%c0_6, %c0_7] : memref<128x128xbf16, #tpu.memory_space<vmem>>, vector<128x128xbf16>
    %cst = arith.constant dense<0.000000e+00> : vector<128x128xf32>
    %9 = tpu.matmul %7, %8, %cst {dimension_numbers = #tpu.dot_dimension_numbers<[1], [0], [0], [1], [0, 0, 1, 1], [], []>} : vector<128x128xbf16>, vector<128x128xbf16>, vector<128x128xf32> -> vector<128x128xf32>
    %10 = arith.addf %5, %9 : vector<128x128xf32>
    %c0_8 = arith.constant 0 : index
    %c0_9 = arith.constant 0 : index
    %11 = vector.load %arg6[%c0_8, %c0_9] : memref<128x128xf32, #tpu.memory_space<vmem>>, vector<128x128xf32>
    tpu.vector_store %arg6[%c0_8, %c0_9], %10 {strides = array<i32>} : memref<128x128xf32, #tpu.memory_space<vmem>>, vector<128x128xf32>,
    %c3_i32 = arith.constant 3 : i32
    %12 = arith.cmpi eq, %arg1, %c3_i32 : i32
    %c0_i32_10 = arith.constant 0 : i32
    %13 = arith.cmpi eq, %arg2, %c0_i32_10 : i32
    %14 = arith.andi %12, %13 : i1
    %15 = arith.extui %14 : i1 to i32
    %c0_i32_11 = arith.constant 0 : i32
    %16 = arith.cmpi ne, %15, %c0_i32_11 : i32
    scf.if %16 {
      %c0_12 = arith.constant 0 : index
      %c0_13 = arith.constant 0 : index
      %17 = vector.load %arg6[%c0_12, %c0_13] : memref<128x128xf32, #tpu.memory_space<vmem>>, vector<128x128xf32>
      %cst_14 = arith.constant 0.000000e+00 : f32
      %18 = vector.broadcast %cst_14 : f32 to vector<128x128xf32>
      %19 = arith.maximumf %17, %18 : vector<128x128xf32>
      %c0_15 = arith.constant 0 : index
      %c0_16 = arith.constant 0 : index
      %20 = vector.load %arg6[%c0_15, %c0_16] : memref<128x128xf32, #tpu.memory_space<vmem>>, vector<128x128xf32>
      tpu.vector_store %arg6[%c0_15, %c0_16], %19 {strides = array<i32>} : memref<128x128xf32, #tpu.memory_space<vmem>>, vector<128x128xf32>,
    } else {
    }
    return
  }
  func.func @transform_0(%arg0: i32, %arg1: i32, %arg2: i32) -> (i32, i32, i32) {
    %c0_i32 = arith.constant 0 : i32
    return %arg1, %arg0, %arg2 : i32, i32, i32
  }
  func.func @transform_1(%arg0: i32, %arg1: i32, %arg2: i32) -> (i32, i32) {
    %c0_i32 = arith.constant 0 : i32
    return %arg2, %arg1 : i32, i32
  }
  func.func @transform_2(%arg0: i32, %arg1: i32, %arg2: i32) -> (i32, i32) {
    %c0_i32 = arith.constant 0 : i32
    %c0_i32_0 = arith.constant 0 : i32
    return %arg0, %c0_i32 : i32, i32
  }
  func.func @transform_3(%arg0: i32, %arg1: i32, %arg2: i32) -> (i32, i32) {
    %c0_i32 = arith.constant 0 : i32
    %c0_i32_0 = arith.constant 0 : i32
    return %arg0, %c0_i32 : i32, i32
  }
}

module attributes {stable_mosaic.version = 11 : i64} {
  func.func @_agg_kernel(%arg0: i32, %arg1: i32, %arg2: i32, %arg3: memref<1x128x128xbf16, #tpu.memory_space<vmem>>, %arg4: memref<128x128xbf16, #tpu.memory_space<vmem>>, %arg5: memref<128x128xf32, #tpu.memory_space<vmem>>, %arg6: memref<128x128xf32, #tpu.memory_space<vmem>>) attributes {dimension_semantics = [#tpu.dimension_semantics<parallel>, #tpu.dimension_semantics<arbitrary>, #tpu.dimension_semantics<arbitrary>], iteration_bounds = array<i64: 1, 4, 1>, scalar_prefetch = 0 : i64, scratch_operands = 0 : i64, tpu.core_type = #tpu.core_type<tc>, window_params = [{transform_indices = @transform_0, window_bounds = array<i64: 1, 128, 128>}, {transform_indices = @transform_1, window_bounds = array<i64: 128, 128>}, {transform_indices = @transform_2, window_bounds = array<i64: 128, 128>}, {transform_indices = @transform_3, window_bounds = array<i64: 128, 128>}]} {
    %c0_i32 = arith.constant 0 : i32
    %0 = arith.cmpi eq, %arg1, %c0_i32 : i32
    %c0_i32_0 = arith.constant 0 : i32
    %1 = arith.cmpi eq, %arg2, %c0_i32_0 : i32
    %2 = arith.andi %0, %1 : i1
    %3 = arith.extui %2 : i1 to i32
    %c0_i32_1 = arith.constant 0 : i32
    %4 = arith.cmpi ne, %3, %c0_i32_1 : i32
    scf.if %4 {
      %c0_10 = arith.constant 0 : index
      %c0_11 = arith.constant 0 : index
      %12 = vector.load %arg5[%c0_10, %c0_11] : memref<128x128xf32, #tpu.memory_space<vmem>>, vector<128x128xf32>
      %c0_12 = arith.constant 0 : index
      %c0_13 = arith.constant 0 : index
      %13 = vector.load %arg6[%c0_12, %c0_13] : memref<128x128xf32, #tpu.memory_space<vmem>>, vector<128x128xf32>
      tpu.vector_store %arg6[%c0_12, %c0_13], %12 {strides = array<i32>} : memref<128x128xf32, #tpu.memory_space<vmem>>, vector<128x128xf32>,
    } else {
    }
    %c0 = arith.constant 0 : index
    %c0_2 = arith.constant 0 : index
    %5 = vector.load %arg6[%c0, %c0_2] : memref<128x128xf32, #tpu.memory_space<vmem>>, vector<128x128xf32>
    %c0_3 = arith.constant 0 : index
    %c0_4 = arith.constant 0 : index
    %c0_5 = arith.constant 0 : index
    %6 = vector.load %arg3[%c0_3, %c0_4, %c0_5] : memref<1x128x128xbf16, #tpu.memory_space<vmem>>, vector<1x128x128xbf16>
    %7 = vector.shape_cast %6 : vector<1x128x128xbf16> to vector<128x128xbf16>
    %c0_6 = arith.constant 0 : index
    %c0_7 = arith.constant 0 : index
    %8 = vector.load %arg4[%c0_6, %c0_7] : memref<128x128xbf16, #tpu.memory_space<vmem>>, vector<128x128xbf16>
    %cst = arith.constant dense<0.000000e+00> : vector<128x128xf32>
    %9 = tpu.matmul %7, %8, %cst {dimension_numbers = #tpu.dot_dimension_numbers<[1], [0], [0], [1], [0, 0, 1, 1], [], []>} : vector<128x128xbf16>, vector<128x128xbf16>, vector<128x128xf32> -> vector<128x128xf32>
    %10 = arith.addf %5, %9 : vector<128x128xf32>
    %c0_8 = arith.constant 0 : index
    %c0_9 = arith.constant 0 : index
    %11 = vector.load %arg6[%c0_8, %c0_9] : memref<128x128xf32, #tpu.memory_space<vmem>>, vector<128x128xf32>
    tpu.vector_store %arg6[%c0_8, %c0_9], %10 {strides = array<i32>} : memref<128x128xf32, #tpu.memory_space<vmem>>, vector<128x128xf32>,
    return
  }
  func.func @transform_0(%arg0: i32, %arg1: i32, %arg2: i32) -> (i32, i32, i32) {
    %c0_i32 = arith.constant 0 : i32
    return %arg1, %arg0, %arg2 : i32, i32, i32
  }
  func.func @transform_1(%arg0: i32, %arg1: i32, %arg2: i32) -> (i32, i32) {
    %c0_i32 = arith.constant 0 : i32
    return %arg2, %arg1 : i32, i32
  }
  func.func @transform_2(%arg0: i32, %arg1: i32, %arg2: i32) -> (i32, i32) {
    %c0_i32 = arith.constant 0 : i32
    %c0_i32_0 = arith.constant 0 : i32
    return %arg0, %c0_i32 : i32, i32
  }
  func.func @transform_3(%arg0: i32, %arg1: i32, %arg2: i32) -> (i32, i32) {
    %c0_i32 = arith.constant 0 : i32
    %c0_i32_0 = arith.constant 0 : i32
    return %arg0, %c0_i32 : i32, i32
  }
}

</mosaic_0001>

<bundles_post_ra>
// kernel: rgcn_forward.7
= control target key start
LH: loop header
LB: loop body
LE: loop exit
PB: predicated region body
PF: predicated region fallthrough
CT: control target
= control target key end

     0   :  { %s962_s12 = smov 0   ;;  %s964_s13 = smov 0   ;;  %s1259_s0 = inlined_call_operand.vmem [shape: bf16[4,128,128], index: 0, kind: input, shape index: {}]   ;;  %s1260_s1 = inlined_call_operand.vmem [shape: bf16[128,512], index: 1, kind: input, shape index: {}]   ;;  %s1261_s2 = inlined_call_operand.vmem [shape: f32[128,128], index: 2, kind: input, shape index: {}]   ;;  %s1262_s3 = inlined_call_operand.vmem [shape: f32[128,128], index: 3, kind: output, shape index: {}]  }
   0x1   :  { %s966_s14 = smov 0   ;;  %s968_s15 = smov 0  }
   0x2   :  { %s970_s16 = smov 0  }
   0x3 LB: > { %s28_s17 = sadd.s32 1, %s936_s15  ;;  %p78_p1 = scmp.ne.s32.totalorder %s928_s13, %s924_s12  ;;  %s940_s16 = sphi %s970_s16, %s13_s16   ;;  %s936_s15 = sphi %s968_s15, %s1266_s15   ;;  %s932_s14 = sphi %s966_s14, %s1265_s14   ;;  %s928_s13 = sphi %s964_s13, %s1264_s13   ;;  %s924_s12 = sphi %s962_s12, %s1263_s12  }
   0x4   : > { %p30_p0 = scmp.ge.s32.totalorder %s28_s17, 4  ;;  %p79_p2 = scmp.eq.s32.totalorder %s940_s16, 0 }
   0x5   : > { %s71_s19 = sadd.s32 1, %s928_s13  ;;  %p744_p5 = scmp.ge.s32.totalorder %s940_s16, 4 }
   0x6   : > { %s1268_s17 = smov (%p30_p0, %s28_s17), 0  ;;  %p80_p3 = por %p79_p2, %p78_p1 }
   0x7   : > { %s67_s18 = ssub.s32 %s936_s15, %s1268_s17  ;;  %165 = sbr.rel (%p744_p5) target bundleno = 32 (0x20), region = 20 }
   0x8   : > { %p69_p4 = scmp.eq.s32.totalorder %s67_s18, 0 }
   0xa   : > { %s997_s20 = scalar_select %p69_p4, %s928_s13, %s71_s19  }
   0xc   : > { %184 = sbr.rel (!%p80_p3) target bundleno = 32 (0x20), region = 28  ;;  %s186_s21 = sand.u32 (%p80_p3), 1, %s928_s13  }
   0xd   : > { %s746_s22 = sshll.u32 (%p80_p3), %s936_s15, 2  ;;  %s745_s23 = sshll.u32 (%p80_p3), %s186_s21, 6 }
   0xe   : > { %s1005_s26 = scalar_lea.vmem (%p80_p3), %s1260_s1, %s746_s22  ;;  %s188_s27 = scalar_lea.vmem (%p80_p3), [#allocation2], %s745_s23 }
   0xf   : > { %v210_v0 = vld [vmem:[%s1005_s26] sm:$0xf] (%p80_p3)  ;;  %v212_v1 = vld [vmem:[%s1005_s26 + $0x10] sm:$0xf] (%p80_p3) }
  0x10   : > { %211 = vst [vmem:[%s188_s27] sm:$0xf] (%p80_p3), %v210_v0  ;;  %v214_v2 = vld [vmem:[%s1005_s26 + $0x20] sm:$0xf] (%p80_p3)  ;;  %v216_v3 = vld [vmem:[%s1005_s26 + $0x30] sm:$0xf] (%p80_p3) }
  0x11   : > { %213 = vst [vmem:[%s188_s27 + $0x4] sm:$0xf] %v212_v1  ;;  %v218_v4 = vld [vmem:[%s1005_s26 + $0x40] sm:$0xf]  ;;  %v220_v5 = vld [vmem:[%s1005_s26 + $0x50] sm:$0xf] }
  0x12   : > { %215 = vst [vmem:[%s188_s27 + $0x8] sm:$0xf] %v214_v2  ;;  %v222_v6 = vld [vmem:[%s1005_s26 + $0x60] sm:$0xf]  ;;  %v224_v7 = vld [vmem:[%s1005_s26 + $0x70] sm:$0xf] }
  0x13   : > { %217 = vst [vmem:[%s188_s27 + $0xc] sm:$0xf] %v216_v3  ;;  %v226_v8 = vld [vmem:[%s1005_s26 + $0x80] sm:$0xf]  ;;  %v228_v9 = vld [vmem:[%s1005_s26 + $0x90] sm:$0xf] }
  0x14   : > { %219 = vst [vmem:[%s188_s27 + $0x10] sm:$0xf] %v218_v4  ;;  %v230_v10 = vld [vmem:[%s1005_s26 + $0xa0] sm:$0xf]  ;;  %v232_v11 = vld [vmem:[%s1005_s26 + $0xb0] sm:$0xf] }
  0x15   : > { %221 = vst [vmem:[%s188_s27 + $0x14] sm:$0xf] %v220_v5  ;;  %v234_v12 = vld [vmem:[%s1005_s26 + $0xc0] sm:$0xf]  ;;  %v236_v13 = vld [vmem:[%s1005_s26 + $0xd0] sm:$0xf] }
  0x16   : > { %223 = vst [vmem:[%s188_s27 + $0x18] sm:$0xf] %v222_v6  ;;  %v238_v14 = vld [vmem:[%s1005_s26 + $0xe0] sm:$0xf]  ;;  %v240_v15 = vld [vmem:[%s1005_s26 + $0xf0] sm:$0xf] }
  0x17   : > { %225 = vst [vmem:[%s188_s27 + $0x1c] sm:$0xf] %v224_v7 }
  0x18   : > { %227 = vst [vmem:[%s188_s27 + $0x20] sm:$0xf] %v226_v8 }
  0x19   : > { %229 = vst [vmem:[%s188_s27 + $0x24] sm:$0xf] %v228_v9 }
  0x1a   : > { %231 = vst [vmem:[%s188_s27 + $0x28] sm:$0xf] %v230_v10 }
  0x1b   : > { %233 = vst [vmem:[%s188_s27 + $0x2c] sm:$0xf] %v232_v11 }
  0x1c   : > { %235 = vst [vmem:[%s188_s27 + $0x30] sm:$0xf] %v234_v12 }
  0x1d   : > { %237 = vst [vmem:[%s188_s27 + $0x34] sm:$0xf] %v236_v13 }
  0x1e   : > { %239 = vst [vmem:[%s188_s27 + $0x38] sm:$0xf] %v238_v14 }
  0x1f   : > { %241 = vst [vmem:[%s188_s27 + $0x3c] sm:$0xf] %v240_v15 }
  0x20 PF: > { %p747_p6 = scmp.ge.s32.totalorder %s940_s16, 1  ;;  %p296_p7 = scmp.lt.s32.totalorder %s940_s16, 5 }
  0x22   : > { %p297_p8 = pnand %p747_p6, %p296_p7 }
  0x23   : > { %s303_s28 = sand.u32 (!%p297_p8), 1, %s924_s12   ;;  %p344_p9 = scmp.lt.s32.totalorder (!%p297_p8), %s932_s14, 3 }
  0x24   : > { %300 = sbr.rel (%p297_p8) target bundleno = 251 (0xfb), region = 69  ;;  %s748_s29 = sshll.u32 (!%p297_p8), %s303_s28, 6 }
  0x25   : > { %p369_p10 = scmp.eq.s32.totalorder (!%p297_p8), %s932_s14, 0  ;;  %s1034_s7 = scalar_lea.vmem (!%p297_p8), [#allocation2], %s748_s29 }
  0x29   : > { %s1270_s14 = smov (!%p344_p9, %s932_s14), 3  ;;  %374 = sbr.rel (!%p369_p10) target bundleno = 58 (0x3a), region = 77  ;;  %v375_v16 = vld [vmem:[%s1261_s2] sm:$0xff] (%p369_p10)  ;;  %v376_v17 = vld [vmem:[%s1261_s2 + $0x8] sm:$0xff] (%p369_p10)  ;;  %v377_v18 = vld [vmem:[%s1261_s2 + $0x10] sm:$0xff] (%p369_p10) }
  0x2a   : > { %s820_s30 = sshll.u32 %s1270_s14, 6  ;;  %391 = vst [vmem:[%s1262_s3] sm:$0xff] (%p369_p10), %v375_v16  ;;  %v378_v19 = vld [vmem:[%s1261_s2 + $0x18] sm:$0xff] (%p369_p10)  ;;  %v379_v20 = vld [vmem:[%s1261_s2 + $0x20] sm:$0xff] (%p369_p10)  ;;  %v380_v21 = vld [vmem:[%s1261_s2 + $0x28] sm:$0xff] (%p369_p10) }
  0x2b   : > { %s1032_s6 = scalar_lea.vmem %s1259_s0, %s820_s30  ;;  %392 = vst [vmem:[%s1262_s3 + $0x8] sm:$0xff] (%p369_p10), %v376_v17  ;;  %v381_v22 = vld [vmem:[%s1261_s2 + $0x30] sm:$0xff] (%p369_p10)  ;;  %v382_v23 = vld [vmem:[%s1261_s2 + $0x38] sm:$0xff] (%p369_p10)  ;;  %v383_v24 = vld [vmem:[%s1261_s2 + $0x40] sm:$0xff] (%p369_p10) }
  0x2c   : > { %393 = vst [vmem:[%s1262_s3 + $0x10] sm:$0xff] (%p369_p10), %v377_v18  ;;  %v384_v25 = vld [vmem:[%s1261_s2 + $0x48] sm:$0xff] (%p369_p10)  ;;  %v385_v26 = vld [vmem:[%s1261_s2 + $0x50] sm:$0xff] (%p369_p10)  ;;  %v386_v27 = vld [vmem:[%s1261_s2 + $0x58] sm:$0xff] (%p369_p10) }
  0x2d   : > { %394 = vst [vmem:[%s1262_s3 + $0x18] sm:$0xff] (%p369_p10), %v378_v19  ;;  %v387_v28 = vld [vmem:[%s1261_s2 + $0x60] sm:$0xff] (%p369_p10)  ;;  %v388_v29 = vld [vmem:[%s1261_s2 + $0x68] sm:$0xff] (%p369_p10)  ;;  %v389_v30 = vld [vmem:[%s1261_s2 + $0x70] sm:$0xff] (%p369_p10) }
  0x2e   : > { %395 = vst [vmem:[%s1262_s3 + $0x20] sm:$0xff] %v379_v20  ;;  %v390_v31 = vld [vmem:[%s1261_s2 + $0x78] sm:$0xff] }
  0x2f   : > { %396 = vst [vmem:[%s1262_s3 + $0x28] sm:$0xff] %v380_v21 }
  0x30   : > { %397 = vst [vmem:[%s1262_s3 + $0x30] sm:$0xff] %v381_v22 }
  0x31   : > { %398 = vst [vmem:[%s1262_s3 + $0x38] sm:$0xff] %v382_v23 }
  0x32   : > { %399 = vst [vmem:[%s1262_s3 + $0x40] sm:$0xff] %v383_v24 }
  0x33   : > { %400 = vst [vmem:[%s1262_s3 + $0x48] sm:$0xff] %v384_v25 }
  0x34   : > { %401 = vst [vmem:[%s1262_s3 + $0x50] sm:$0xff] %v385_v26 }
  0x35   : > { %402 = vst [vmem:[%s1262_s3 + $0x58] sm:$0xff] %v386_v27 }
  0x36   : > { %403 = vst [vmem:[%s1262_s3 + $0x60] sm:$0xff] %v387_v28 }
  0x37   : > { %404 = vst [vmem:[%s1262_s3 + $0x68] sm:$0xff] %v388_v29 }
  0x38   : > { %405 = vst [vmem:[%s1262_s3 + $0x70] sm:$0xff] %v389_v30 }
  0x39   : > { %406 = vst [vmem:[%s1262_s3 + $0x78] sm:$0xff] %v390_v31 }
  0x3a PF: > { %v837_v32 = vld [vmem:[%s1034_s7 + $0x38] sm:$0xff]  ;;  %v836_v33 = vld [vmem:[%s1034_s7 + $0x30] sm:$0xff]  ;;  %v835_v34 = vld [vmem:[%s1034_s7 + $0x28] sm:$0xff] }
  0x3b   : > { %551 = vmatpush.bf16.msra.mxu0 %v837_v32  ;;  %838 = vmatpush.bf16.msra.mxu1 %v837_v32  ;;  %v834_v35 = vld [vmem:[%s1034_s7 + $0x20] sm:$0xff]  ;;  %v833_v36 = vld [vmem:[%s1034_s7 + $0x18] sm:$0xff]  ;;  %v832_v37 = vld [vmem:[%s1034_s7 + $0x10] sm:$0xff] }
  0x3c   : > { %839 = vmatpush.bf16.msra.mxu2 %v837_v32  ;;  %840 = vmatpush.bf16.msra.mxu3 %v837_v32  ;;  %v831_v38 = vld [vmem:[%s1034_s7 + $0x8] sm:$0xff]  ;;  %v830_v39 = vld [vmem:[%s1034_s7] sm:$0xff]  ;;  %v824_v41 = vld [vmem:[%s1032_s6 + $0x10] sm:$0xff] }
  0x3d   : > { %v822_v40 = vld [vmem:[%s1032_s6] sm:$0xff]  ;;  %v828_v43 = vld [vmem:[%s1032_s6 + $0x30] sm:$0xff]  ;;  %v823_v44 = vld [vmem:[%s1032_s6 + $0x8] sm:$0xff] }
  0x3e   : > { %v826_v42 = vld [vmem:[%s1032_s6 + $0x20] sm:$0xff]  ;;  %v825_v45 = vld [vmem:[%s1032_s6 + $0x18] sm:$0xff]  ;;  %v827_v46 = vld [vmem:[%s1032_s6 + $0x28] sm:$0xff] }
  0x3f   : > { %552 = vmatpush.bf16.msra.mxu0 %v836_v33  ;;  %841 = vmatpush.bf16.msra.mxu1 %v836_v33  ;;  %v829_v47 = vld [vmem:[%s1032_s6 + $0x38] sm:$0xff]  ;;  %v407_v48 = vld [vmem:[%s1262_s3] sm:$0xff]  ;;  %v408_v56 = vld [vmem:[%s1262_s3 + $0x8] sm:$0xff] }
  0x40   : > { %842 = vmatpush.bf16.msra.mxu2 %v836_v33  ;;  %843 = vmatpush.bf16.msra.mxu3 %v836_v33  ;;  %v411_v49 = vld [vmem:[%s1262_s3 + $0x20] sm:$0xff]  ;;  %v412_v57 = vld [vmem:[%s1262_s3 + $0x28] sm:$0xff]  ;;  %v409_v4 = vld [vmem:[%s1262_s3 + $0x10] sm:$0xff] }
  0x41   : > { %v415_v54 = vld [vmem:[%s1262_s3 + $0x40] sm:$0xff]  ;;  %v416_v2 = vld [vmem:[%s1262_s3 + $0x48] sm:$0xff]  ;;  %v413_v5 = vld [vmem:[%s1262_s3 + $0x30] sm:$0xff] }
  0x42   : > { %v419_v55 = vld [vmem:[%s1262_s3 + $0x60] sm:$0xff]  ;;  %v420_v3 = vld [vmem:[%s1262_s3 + $0x68] sm:$0xff]  ;;  %v417_v14 = vld [vmem:[%s1262_s3 + $0x50] sm:$0xff] }
  0x43   : > { %553 = vmatpush.bf16.msra.mxu0 %v835_v34  ;;  %844 = vmatpush.bf16.msra.mxu1 %v835_v34  ;;  %v421_v15 = vld [vmem:[%s1262_s3 + $0x70] sm:$0xff]  ;;  %v410_v16 = vld [vmem:[%s1262_s3 + $0x18] sm:$0xff] }
  0x44   : > { %845 = vmatpush.bf16.msra.mxu2 %v835_v34  ;;  %846 = vmatpush.bf16.msra.mxu3 %v835_v34  ;;  %v414_v17 = vld [vmem:[%s1262_s3 + $0x38] sm:$0xff] }
  0x45   : > { %v418_v26 = vld [vmem:[%s1262_s3 + $0x58] sm:$0xff] }
  0x46   : > { %v422_v27 = vld [vmem:[%s1262_s3 + $0x78] sm:$0xff] }
  0x47   : > { %554 = vmatpush.bf16.msra.mxu0 %v834_v35  ;;  %847 = vmatpush.bf16.msra.mxu1 %v834_v35 }
  0x48   : > { %848 = vmatpush.bf16.msra.mxu2 %v834_v35  ;;  %849 = vmatpush.bf16.msra.mxu3 %v834_v35 }
  0x4b   : > { %555 = vmatpush.bf16.msra.mxu0 %v833_v36  ;;  %850 = vmatpush.bf16.msra.mxu1 %v833_v36 }
  0x4c   : > { %851 = vmatpush.bf16.msra.mxu2 %v833_v36  ;;  %852 = vmatpush.bf16.msra.mxu3 %v833_v36 }
  0x4f   : > { %556 = vmatpush.bf16.msra.mxu0 %v832_v37  ;;  %853 = vmatpush.bf16.msra.mxu1 %v832_v37 }
  0x50   : > { %854 = vmatpush.bf16.msra.mxu2 %v832_v37  ;;  %855 = vmatpush.bf16.msra.mxu3 %v832_v37 }
  0x53   : > { %557 = vmatpush.bf16.msra.mxu0 %v831_v38  ;;  %856 = vmatpush.bf16.msra.mxu1 %v831_v38 }
  0x54   : > { %857 = vmatpush.bf16.msra.mxu2 %v831_v38  ;;  %858 = vmatpush.bf16.msra.mxu3 %v831_v38 }
  0x57   : > { %558 = vmatpush.bf16.msra.mxu0 %v830_v39  ;;  %859 = vmatpush.bf16.msra.mxu1 %v830_v39 }
  0x58   : > { %860 = vmatpush.bf16.msra.mxu2 %v830_v39  ;;  %861 = vmatpush.bf16.msra.mxu3 %v830_v39 }
  0x5a   : > { %559 = vmatmul.bf16.vlgmr.msra.gmra.mxu0 %v822_v40  ;;  %569 = vmatmul.bf16.vlgmr.msra.gmra.mxu1 %v824_v41 }
  0x5b   : > { %579 = vmatmul.bf16.vlgmr.msra.gmra.mxu2 %v826_v42  ;;  %589 = vmatmul.bf16.vlgmr.msra.gmra.mxu3 %v828_v43 }
  0x6a   : > { %564 = vmatmul.bf16.gmra.mxu0 %v823_v44  ;;  %574 = vmatmul.bf16.gmra.mxu1 %v825_v45 }
  0x6b   : > { %584 = vmatmul.bf16.gmra.mxu2 %v827_v46  ;;  %594 = vmatmul.bf16.gmra.mxu3 %v829_v47 }
  0xd7   : > { %v560_v50 = vpop.f32.mrf.mxu0  ;;  %v570_v51 = vpop.f32.mrf.mxu1 }
  0xd8   : > { %v600_v52 = vadd.f32 %v560_v50, %v407_v48  ;;  %v604_v53 = vadd.f32 %v570_v51, %v411_v49 }
  0xda   : > { %616 = vst [vmem:[%s1262_s3] sm:$0xff] %v600_v52 }
  0xdb   : > { %620 = vst [vmem:[%s1262_s3 + $0x20] sm:$0xff] %v604_v53 }
  0xde   : > { %v580_v58 = vpop.f32.mrf.mxu2  ;;  %v590_v59 = vpop.f32.mrf.mxu3 }
  0xdf   : > { %v608_v60 = vadd.f32 %v580_v58, %v415_v54  ;;  %v612_v61 = vadd.f32 %v590_v59, %v419_v55  ;;  %v562_v62 = vpop.f32.mrf.mxu0  ;;  %v572_v63 = vpop.f32.mrf.mxu1 }
  0xe0   : > { %v601_v0 = vadd.f32 %v562_v62, %v408_v56  ;;  %v605_v1 = vadd.f32 %v572_v63, %v412_v57 }
  0xe1   : > { %624 = vst [vmem:[%s1262_s3 + $0x40] sm:$0xff] %v608_v60 }
  0xe2   : > { %628 = vst [vmem:[%s1262_s3 + $0x60] sm:$0xff] %v612_v61 }
  0xe3   : > { %617 = vst [vmem:[%s1262_s3 + $0x8] sm:$0xff] %v601_v0 }
  0xe4   : > { %621 = vst [vmem:[%s1262_s3 + $0x28] sm:$0xff] %v605_v1 }
  0xe6   : > { %v582_v6 = vpop.f32.mrf.mxu2  ;;  %v592_v7 = vpop.f32.mrf.mxu3 }
  0xe7   : > { %v609_v8 = vadd.f32 %v582_v6, %v416_v2  ;;  %v613_v9 = vadd.f32 %v592_v7, %v420_v3  ;;  %v565_v10 = vpop.f32.mrf.mxu0  ;;  %v575_v11 = vpop.f32.mrf.mxu1 }
  0xe8   : > { %v602_v12 = vadd.f32 %v565_v10, %v409_v4  ;;  %v606_v13 = vadd.f32 %v575_v11, %v413_v5 }
  0xe9   : > { %625 = vst [vmem:[%s1262_s3 + $0x48] sm:$0xff] %v609_v8 }
  0xea   : > { %629 = vst [vmem:[%s1262_s3 + $0x68] sm:$0xff] %v613_v9 }
  0xeb   : > { %618 = vst [vmem:[%s1262_s3 + $0x10] sm:$0xff] %v602_v12 }
  0xec   : > { %622 = vst [vmem:[%s1262_s3 + $0x30] sm:$0xff] %v606_v13 }
  0xee   : > { %v585_v18 = vpop.f32.mrf.mxu2  ;;  %v595_v19 = vpop.f32.mrf.mxu3 }
  0xef   : > { %v610_v20 = vadd.f32 %v585_v18, %v417_v14  ;;  %v614_v21 = vadd.f32 %v595_v19, %v421_v15  ;;  %v567_v22 = vpop.f32.mrf.mxu0  ;;  %v577_v23 = vpop.f32.mrf.mxu1 }
  0xf0   : > { %v603_v24 = vadd.f32 %v567_v22, %v410_v16  ;;  %v607_v25 = vadd.f32 %v577_v23, %v414_v17 }
  0xf1   : > { %626 = vst [vmem:[%s1262_s3 + $0x50] sm:$0xff] %v610_v20 }
  0xf2   : > { %630 = vst [vmem:[%s1262_s3 + $0x70] sm:$0xff] %v614_v21 }
  0xf3   : > { %619 = vst [vmem:[%s1262_s3 + $0x18] sm:$0xff] %v603_v24 }
  0xf4   : > { %623 = vst [vmem:[%s1262_s3 + $0x38] sm:$0xff] %v607_v25 }
  0xf6   : > { %v587_v28 = vpop.f32.mrf.mxu2  ;;  %v597_v29 = vpop.f32.mrf.mxu3 }
  0xf7   : > { %v611_v30 = vadd.f32 %v587_v28, %v418_v26  ;;  %v615_v31 = vadd.f32 %v597_v29, %v422_v27 }
  0xf9   : > { %627 = vst [vmem:[%s1262_s3 + $0x58] sm:$0xff] %v611_v30 }
  0xfa   : > { %631 = vst [vmem:[%s1262_s3 + $0x78] sm:$0xff] %v615_v31 }
  0xfb PF: > { %s13_s16 = sadd.s32 1, %s940_s16   ;;  %s1263_s12 = smov %s928_s13 }
  0xfc   : > { %p10_p11 = scmp.ge.s32.totalorder %s13_s16, 6   ;;  %s1264_s13 = smov %s997_s20 }
  0xfd   : > { %s1265_s14 = smov %s936_s15  ;;  %s1266_s15 = smov %s1268_s17 }
  0xfe   :  { %12 = sbr.rel (!%p10_p11) target bundleno = 3 (0x3), region = 118 }

// kernel: rgcn_forward.5
= control target key start
LH: loop header
LB: loop body
LE: loop exit
PB: predicated region body
PF: predicated region fallthrough
CT: control target
= control target key end

     0   :  { %s1017_s12 = smov 0   ;;  %s1019_s13 = smov 0   ;;  %s1413_s0 = inlined_call_operand.vmem [shape: bf16[4,128,128], index: 0, kind: input, shape index: {}]   ;;  %s1414_s1 = inlined_call_operand.vmem [shape: bf16[128,512], index: 1, kind: input, shape index: {}]   ;;  %s1415_s2 = inlined_call_operand.vmem [shape: f32[128,128], index: 2, kind: input, shape index: {}]   ;;  %s1416_s3 = inlined_call_operand.vmem [shape: f32[128,128], index: 3, kind: output, shape index: {}]  }
   0x1   :  { %s1021_s14 = smov 0   ;;  %s1023_s15 = smov 0  }
   0x2   :  { %s1025_s16 = smov 0  }
   0x3 LB: > { %s28_s17 = sadd.s32 1, %s991_s15  ;;  %p78_p1 = scmp.ne.s32.totalorder %s983_s13, %s979_s12  ;;  %s995_s16 = sphi %s1025_s16, %s13_s16   ;;  %s991_s15 = sphi %s1023_s15, %s1420_s15   ;;  %s987_s14 = sphi %s1021_s14, %s1419_s14   ;;  %s983_s13 = sphi %s1019_s13, %s1418_s13   ;;  %s979_s12 = sphi %s1017_s12, %s1417_s12  }
   0x4   : > { %p30_p0 = scmp.ge.s32.totalorder %s28_s17, 4  ;;  %p79_p2 = scmp.eq.s32.totalorder %s995_s16, 0 }
   0x5   : > { %s71_s19 = sadd.s32 1, %s983_s13  ;;  %p797_p5 = scmp.ge.s32.totalorder %s995_s16, 4 }
   0x6   : > { %s1422_s17 = smov (%p30_p0, %s28_s17), 0  ;;  %p80_p3 = por %p79_p2, %p78_p1 }
   0x7   : > { %s67_s18 = ssub.s32 %s991_s15, %s1422_s17  ;;  %165 = sbr.rel (%p797_p5) target bundleno = 32 (0x20), region = 20 }
   0x8   : > { %p69_p4 = scmp.eq.s32.totalorder %s67_s18, 0 }
   0xa   : > { %s1052_s20 = scalar_select %p69_p4, %s983_s13, %s71_s19  }
   0xc   : > { %184 = sbr.rel (!%p80_p3) target bundleno = 32 (0x20), region = 28  ;;  %s186_s21 = sand.u32 (%p80_p3), 1, %s983_s13  }
   0xd   : > { %s799_s22 = sshll.u32 (%p80_p3), %s991_s15, 2  ;;  %s798_s23 = sshll.u32 (%p80_p3), %s186_s21, 6 }
   0xe   : > { %s1060_s26 = scalar_lea.vmem (%p80_p3), %s1414_s1, %s799_s22  ;;  %s188_s27 = scalar_lea.vmem (%p80_p3), [#allocation2], %s798_s23 }
   0xf   : > { %v210_v0 = vld [vmem:[%s1060_s26] sm:$0xf] (%p80_p3)  ;;  %v212_v1 = vld [vmem:[%s1060_s26 + $0x10] sm:$0xf] (%p80_p3) }
  0x10   : > { %211 = vst [vmem:[%s188_s27] sm:$0xf] (%p80_p3), %v210_v0  ;;  %v214_v2 = vld [vmem:[%s1060_s26 + $0x20] sm:$0xf] (%p80_p3)  ;;  %v216_v3 = vld [vmem:[%s1060_s26 + $0x30] sm:$0xf] (%p80_p3) }
  0x11   : > { %213 = vst [vmem:[%s188_s27 + $0x4] sm:$0xf] %v212_v1  ;;  %v218_v4 = vld [vmem:[%s1060_s26 + $0x40] sm:$0xf]  ;;  %v220_v5 = vld [vmem:[%s1060_s26 + $0x50] sm:$0xf] }
  0x12   : > { %215 = vst [vmem:[%s188_s27 + $0x8] sm:$0xf] %v214_v2  ;;  %v222_v6 = vld [vmem:[%s1060_s26 + $0x60] sm:$0xf]  ;;  %v224_v7 = vld [vmem:[%s1060_s26 + $0x70] sm:$0xf] }
  0x13   : > { %217 = vst [vmem:[%s188_s27 + $0xc] sm:$0xf] %v216_v3  ;;  %v226_v8 = vld [vmem:[%s1060_s26 + $0x80] sm:$0xf]  ;;  %v228_v9 = vld [vmem:[%s1060_s26 + $0x90] sm:$0xf] }
  0x14   : > { %219 = vst [vmem:[%s188_s27 + $0x10] sm:$0xf] %v218_v4  ;;  %v230_v10 = vld [vmem:[%s1060_s26 + $0xa0] sm:$0xf]  ;;  %v232_v11 = vld [vmem:[%s1060_s26 + $0xb0] sm:$0xf] }
  0x15   : > { %221 = vst [vmem:[%s188_s27 + $0x14] sm:$0xf] %v220_v5  ;;  %v234_v12 = vld [vmem:[%s1060_s26 + $0xc0] sm:$0xf]  ;;  %v236_v13 = vld [vmem:[%s1060_s26 + $0xd0] sm:$0xf] }
  0x16   : > { %223 = vst [vmem:[%s188_s27 + $0x18] sm:$0xf] %v222_v6  ;;  %v238_v14 = vld [vmem:[%s1060_s26 + $0xe0] sm:$0xf]  ;;  %v240_v15 = vld [vmem:[%s1060_s26 + $0xf0] sm:$0xf] }
  0x17   : > { %225 = vst [vmem:[%s188_s27 + $0x1c] sm:$0xf] %v224_v7 }
  0x18   : > { %227 = vst [vmem:[%s188_s27 + $0x20] sm:$0xf] %v226_v8 }
  0x19   : > { %229 = vst [vmem:[%s188_s27 + $0x24] sm:$0xf] %v228_v9 }
  0x1a   : > { %231 = vst [vmem:[%s188_s27 + $0x28] sm:$0xf] %v230_v10 }
  0x1b   : > { %233 = vst [vmem:[%s188_s27 + $0x2c] sm:$0xf] %v232_v11 }
  0x1c   : > { %235 = vst [vmem:[%s188_s27 + $0x30] sm:$0xf] %v234_v12 }
  0x1d   : > { %237 = vst [vmem:[%s188_s27 + $0x34] sm:$0xf] %v236_v13 }
  0x1e   : > { %239 = vst [vmem:[%s188_s27 + $0x38] sm:$0xf] %v238_v14 }
  0x1f   : > { %241 = vst [vmem:[%s188_s27 + $0x3c] sm:$0xf] %v240_v15 }
  0x20 PF: > { %p800_p6 = scmp.ge.s32.totalorder %s995_s16, 1  ;;  %p296_p7 = scmp.lt.s32.totalorder %s995_s16, 5 }
  0x22   : > { %p297_p8 = pnand %p800_p6, %p296_p7 }
  0x23   : > { %s303_s28 = sand.u32 (!%p297_p8), 1, %s979_s12   ;;  %p344_p9 = scmp.lt.s32.totalorder (!%p297_p8), %s987_s14, 3 }
  0x24   : > { %300 = sbr.rel (%p297_p8) target bundleno = 261 (0x105), region = 69  ;;  %s801_s29 = sshll.u32 (!%p297_p8), %s303_s28, 6 }
  0x25   : > { %p369_p10 = scmp.eq.s32.totalorder (!%p297_p8), %s987_s14, 0  ;;  %s1089_s8 = scalar_lea.vmem (!%p297_p8), [#allocation2], %s801_s29 }
  0x29   : > { %s345_s30 = scalar_select %p344_p9, %s987_s14, 3  ;;  %v375_v16 = vld [vmem:[%s1415_s2] sm:$0xff] (%p369_p10)  ;;  %v376_v17 = vld [vmem:[%s1415_s2 + $0x8] sm:$0xff] (%p369_p10)  ;;  %v377_v18 = vld [vmem:[%s1415_s2 + $0x10] sm:$0xff] (%p369_p10) }
  0x2a   : > { %374 = sbr.rel (!%p369_p10) target bundleno = 58 (0x3a), region = 77  ;;  %391 = vst [vmem:[%s1416_s3] sm:$0xff] (%p369_p10), %v375_v16  ;;  %v378_v19 = vld [vmem:[%s1415_s2 + $0x18] sm:$0xff] (%p369_p10)  ;;  %v379_v20 = vld [vmem:[%s1415_s2 + $0x20] sm:$0xff] (%p369_p10)  ;;  %v380_v21 = vld [vmem:[%s1415_s2 + $0x28] sm:$0xff] (%p369_p10) }
  0x2b   : > { %s874_s4 = sshll.u32 %s345_s30, 6  ;;  %392 = vst [vmem:[%s1416_s3 + $0x8] sm:$0xff] (%p369_p10), %v376_v17  ;;  %v381_v22 = vld [vmem:[%s1415_s2 + $0x30] sm:$0xff] (%p369_p10)  ;;  %v382_v23 = vld [vmem:[%s1415_s2 + $0x38] sm:$0xff] (%p369_p10)  ;;  %v383_v24 = vld [vmem:[%s1415_s2 + $0x40] sm:$0xff] (%p369_p10) }
  0x2c   : > { %s1087_s7 = scalar_lea.vmem %s1413_s0, %s874_s4  ;;  %393 = vst [vmem:[%s1416_s3 + $0x10] sm:$0xff] (%p369_p10), %v377_v18  ;;  %v384_v25 = vld [vmem:[%s1415_s2 + $0x48] sm:$0xff] (%p369_p10)  ;;  %v385_v26 = vld [vmem:[%s1415_s2 + $0x50] sm:$0xff] (%p369_p10)  ;;  %v386_v27 = vld [vmem:[%s1415_s2 + $0x58] sm:$0xff] (%p369_p10) }
  0x2d   : > { %394 = vst [vmem:[%s1416_s3 + $0x18] sm:$0xff] (%p369_p10), %v378_v19  ;;  %v387_v28 = vld [vmem:[%s1415_s2 + $0x60] sm:$0xff] (%p369_p10)  ;;  %v388_v29 = vld [vmem:[%s1415_s2 + $0x68] sm:$0xff] (%p369_p10)  ;;  %v389_v30 = vld [vmem:[%s1415_s2 + $0x70] sm:$0xff] (%p369_p10) }
  0x2e   : > { %395 = vst [vmem:[%s1416_s3 + $0x20] sm:$0xff] (%p369_p10), %v379_v20  ;;  %v390_v31 = vld [vmem:[%s1415_s2 + $0x78] sm:$0xff] (%p369_p10) }
  0x2f   : > { %396 = vst [vmem:[%s1416_s3 + $0x28] sm:$0xff] %v380_v21 }
  0x30   : > { %397 = vst [vmem:[%s1416_s3 + $0x30] sm:$0xff] %v381_v22 }
  0x31   : > { %398 = vst [vmem:[%s1416_s3 + $0x38] sm:$0xff] %v382_v23 }
  0x32   : > { %399 = vst [vmem:[%s1416_s3 + $0x40] sm:$0xff] %v383_v24 }
  0x33   : > { %400 = vst [vmem:[%s1416_s3 + $0x48] sm:$0xff] %v384_v25 }
  0x34   : > { %401 = vst [vmem:[%s1416_s3 + $0x50] sm:$0xff] %v385_v26 }
  0x35   : > { %402 = vst [vmem:[%s1416_s3 + $0x58] sm:$0xff] %v386_v27 }
  0x36   : > { %403 = vst [vmem:[%s1416_s3 + $0x60] sm:$0xff] %v387_v28 }
  0x37   : > { %404 = vst [vmem:[%s1416_s3 + $0x68] sm:$0xff] %v388_v29 }
  0x38   : > { %405 = vst [vmem:[%s1416_s3 + $0x70] sm:$0xff] %v389_v30 }
  0x39   : > { %406 = vst [vmem:[%s1416_s3 + $0x78] sm:$0xff] %v390_v31 }
  0x3a PF: > { %v891_v32 = vld [vmem:[%s1089_s8 + $0x38] sm:$0xff]  ;;  %v890_v33 = vld [vmem:[%s1089_s8 + $0x30] sm:$0xff]  ;;  %v889_v34 = vld [vmem:[%s1089_s8 + $0x28] sm:$0xff]  ;;  %p632_p11 = scmp.eq.s32.totalorder %s987_s14, 3 }
  0x3b   : > { %551 = vmatpush.bf16.msra.mxu0 %v891_v32  ;;  %893 = vmatpush.bf16.msra.mxu1 %v891_v32  ;;  %v888_v35 = vld [vmem:[%s1089_s8 + $0x20] sm:$0xff]  ;;  %v887_v36 = vld [vmem:[%s1089_s8 + $0x18] sm:$0xff]  ;;  %v886_v37 = vld [vmem:[%s1089_s8 + $0x10] sm:$0xff] }
  0x3c   : > { %894 = vmatpush.bf16.msra.mxu2 %v891_v32  ;;  %895 = vmatpush.bf16.msra.mxu3 %v891_v32  ;;  %v885_v38 = vld [vmem:[%s1089_s8 + $0x8] sm:$0xff]  ;;  %v884_v39 = vld [vmem:[%s1089_s8] sm:$0xff]  ;;  %v878_v41 = vld [vmem:[%s1087_s7 + $0x10] sm:$0xff] }
  0x3d   : > { %v876_v40 = vld [vmem:[%s1087_s7] sm:$0xff]  ;;  %v882_v43 = vld [vmem:[%s1087_s7 + $0x30] sm:$0xff]  ;;  %v877_v44 = vld [vmem:[%s1087_s7 + $0x8] sm:$0xff] }
  0x3e   : > { %v880_v42 = vld [vmem:[%s1087_s7 + $0x20] sm:$0xff]  ;;  %v879_v45 = vld [vmem:[%s1087_s7 + $0x18] sm:$0xff]  ;;  %v881_v46 = vld [vmem:[%s1087_s7 + $0x28] sm:$0xff] }
  0x3f   : > { %552 = vmatpush.bf16.msra.mxu0 %v890_v33  ;;  %896 = vmatpush.bf16.msra.mxu1 %v890_v33  ;;  %v883_v47 = vld [vmem:[%s1087_s7 + $0x38] sm:$0xff]  ;;  %v407_v48 = vld [vmem:[%s1416_s3] sm:$0xff]  ;;  %v408_v56 = vld [vmem:[%s1416_s3 + $0x8] sm:$0xff] }
  0x40   : > { %897 = vmatpush.bf16.msra.mxu2 %v890_v33  ;;  %898 = vmatpush.bf16.msra.mxu3 %v890_v33  ;;  %v411_v49 = vld [vmem:[%s1416_s3 + $0x20] sm:$0xff]  ;;  %v412_v57 = vld [vmem:[%s1416_s3 + $0x28] sm:$0xff]  ;;  %v409_v4 = vld [vmem:[%s1416_s3 + $0x10] sm:$0xff] }
  0x41   : > { %v415_v54 = vld [vmem:[%s1416_s3 + $0x40] sm:$0xff]  ;;  %v416_v2 = vld [vmem:[%s1416_s3 + $0x48] sm:$0xff]  ;;  %v413_v5 = vld [vmem:[%s1416_s3 + $0x30] sm:$0xff] }
  0x42   : > { %v419_v55 = vld [vmem:[%s1416_s3 + $0x60] sm:$0xff]  ;;  %v420_v3 = vld [vmem:[%s1416_s3 + $0x68] sm:$0xff]  ;;  %v417_v14 = vld [vmem:[%s1416_s3 + $0x50] sm:$0xff] }
  0x43   : > { %553 = vmatpush.bf16.msra.mxu0 %v889_v34  ;;  %899 = vmatpush.bf16.msra.mxu1 %v889_v34  ;;  %v421_v15 = vld [vmem:[%s1416_s3 + $0x70] sm:$0xff]  ;;  %v410_v16 = vld [vmem:[%s1416_s3 + $0x18] sm:$0xff] }
  0x44   : > { %900 = vmatpush.bf16.msra.mxu2 %v889_v34  ;;  %901 = vmatpush.bf16.msra.mxu3 %v889_v34  ;;  %v414_v17 = vld [vmem:[%s1416_s3 + $0x38] sm:$0xff] }
  0x45   : > { %v418_v26 = vld [vmem:[%s1416_s3 + $0x58] sm:$0xff] }
  0x46   : > { %v422_v27 = vld [vmem:[%s1416_s3 + $0x78] sm:$0xff] }
  0x47   : > { %554 = vmatpush.bf16.msra.mxu0 %v888_v35  ;;  %902 = vmatpush.bf16.msra.mxu1 %v888_v35 }
  0x48   : > { %903 = vmatpush.bf16.msra.mxu2 %v888_v35  ;;  %904 = vmatpush.bf16.msra.mxu3 %v888_v35 }
  0x4b   : > { %555 = vmatpush.bf16.msra.mxu0 %v887_v36  ;;  %905 = vmatpush.bf16.msra.mxu1 %v887_v36 }
  0x4c   : > { %906 = vmatpush.bf16.msra.mxu2 %v887_v36  ;;  %907 = vmatpush.bf16.msra.mxu3 %v887_v36 }
  0x4f   : > { %556 = vmatpush.bf16.msra.mxu0 %v886_v37  ;;  %908 = vmatpush.bf16.msra.mxu1 %v886_v37 }
  0x50   : > { %909 = vmatpush.bf16.msra.mxu2 %v886_v37  ;;  %910 = vmatpush.bf16.msra.mxu3 %v886_v37 }
  0x53   : > { %557 = vmatpush.bf16.msra.mxu0 %v885_v38  ;;  %911 = vmatpush.bf16.msra.mxu1 %v885_v38 }
  0x54   : > { %912 = vmatpush.bf16.msra.mxu2 %v885_v38  ;;  %913 = vmatpush.bf16.msra.mxu3 %v885_v38 }
  0x57   : > { %558 = vmatpush.bf16.msra.mxu0 %v884_v39  ;;  %914 = vmatpush.bf16.msra.mxu1 %v884_v39 }
  0x58   : > { %915 = vmatpush.bf16.msra.mxu2 %v884_v39  ;;  %916 = vmatpush.bf16.msra.mxu3 %v884_v39 }
  0x5a   : > { %559 = vmatmul.bf16.vlgmr.msra.gmra.mxu0 %v876_v40  ;;  %569 = vmatmul.bf16.vlgmr.msra.gmra.mxu1 %v878_v41 }
  0x5b   : > { %579 = vmatmul.bf16.vlgmr.msra.gmra.mxu2 %v880_v42  ;;  %589 = vmatmul.bf16.vlgmr.msra.gmra.mxu3 %v882_v43 }
  0x6a   : > { %564 = vmatmul.bf16.gmra.mxu0 %v877_v44  ;;  %574 = vmatmul.bf16.gmra.mxu1 %v879_v45 }
  0x6b   : > { %584 = vmatmul.bf16.gmra.mxu2 %v881_v46  ;;  %594 = vmatmul.bf16.gmra.mxu3 %v883_v47 }
  0xd7   : > { %v560_v50 = vpop.f32.mrf.mxu0  ;;  %v570_v51 = vpop.f32.mrf.mxu1 }
  0xd8   : > { %v600_v52 = vadd.f32 %v560_v50, %v407_v48  ;;  %v604_v53 = vadd.f32 %v570_v51, %v411_v49 }
  0xda   : > { %616 = vst [vmem:[%s1416_s3] sm:$0xff] %v600_v52 }
  0xdb   : > { %620 = vst [vmem:[%s1416_s3 + $0x20] sm:$0xff] %v604_v53 }
  0xde   : > { %v580_v58 = vpop.f32.mrf.mxu2  ;;  %v590_v59 = vpop.f32.mrf.mxu3 }
  0xdf   : > { %v608_v60 = vadd.f32 %v580_v58, %v415_v54  ;;  %v612_v61 = vadd.f32 %v590_v59, %v419_v55  ;;  %v562_v62 = vpop.f32.mrf.mxu0  ;;  %v572_v63 = vpop.f32.mrf.mxu1 }
  0xe0   : > { %v601_v0 = vadd.f32 %v562_v62, %v408_v56  ;;  %v605_v1 = vadd.f32 %v572_v63, %v412_v57 }
  0xe1   : > { %624 = vst [vmem:[%s1416_s3 + $0x40] sm:$0xff] %v608_v60  ;;  %v637_v32 = vld [vmem:[%s1416_s3] sm:$0xff] (%p632_p11) }
  0xe2   : > { %628 = vst [vmem:[%s1416_s3 + $0x60] sm:$0xff] %v612_v61  ;;  %v653_v35 = vmax.f32 (%p632_p11), %v637_v32, 0.0  ;;  %v641_v39 = vld [vmem:[%s1416_s3 + $0x20] sm:$0xff] (%p632_p11) }
  0xe3   : > { %617 = vst [vmem:[%s1416_s3 + $0x8] sm:$0xff] %v601_v0  ;;  %v657_v43 = vmax.f32 (%p632_p11), %v641_v39, 0.0 }
  0xe4   : > { %621 = vst [vmem:[%s1416_s3 + $0x28] sm:$0xff] %v605_v1 }
  0xe5   : > { %669 = vst [vmem:[%s1416_s3] sm:$0xff] (%p632_p11), %v653_v35 }
  0xe6   : > { %v582_v6 = vpop.f32.mrf.mxu2  ;;  %v592_v7 = vpop.f32.mrf.mxu3  ;;  %673 = vst [vmem:[%s1416_s3 + $0x20] sm:$0xff] (%p632_p11), %v657_v43 }
  0xe7   : > { %v609_v8 = vadd.f32 %v582_v6, %v416_v2  ;;  %v613_v9 = vadd.f32 %v592_v7, %v420_v3  ;;  %v565_v10 = vpop.f32.mrf.mxu0  ;;  %v575_v11 = vpop.f32.mrf.mxu1 }
  0xe8   : > { %v602_v12 = vadd.f32 %v565_v10, %v409_v4  ;;  %v606_v13 = vadd.f32 %v575_v11, %v413_v5  ;;  %v645_v46 = vld [vmem:[%s1416_s3 + $0x40] sm:$0xff] (%p632_p11) }
  0xe9   : > { %625 = vst [vmem:[%s1416_s3 + $0x48] sm:$0xff] %v609_v8  ;;  %v661_v51 = vmax.f32 (%p632_p11), %v645_v46, 0.0  ;;  %v649_v54 = vld [vmem:[%s1416_s3 + $0x60] sm:$0xff] (%p632_p11) }
  0xea   : > { %629 = vst [vmem:[%s1416_s3 + $0x68] sm:$0xff] %v613_v9  ;;  %v638_v33 = vld [vmem:[%s1416_s3 + $0x8] sm:$0xff] (%p632_p11)  ;;  %v665_v59 = vmax.f32 (%p632_p11), %v649_v54, 0.0 }
  0xeb   : > { %618 = vst [vmem:[%s1416_s3 + $0x10] sm:$0xff] %v602_v12  ;;  %v654_v36 = vmax.f32 (%p632_p11), %v638_v33, 0.0  ;;  %v642_v40 = vld [vmem:[%s1416_s3 + $0x28] sm:$0xff] (%p632_p11) }
  0xec   : > { %622 = vst [vmem:[%s1416_s3 + $0x30] sm:$0xff] %v606_v13  ;;  %v658_v45 = vmax.f32 (%p632_p11), %v642_v40, 0.0 }
  0xed   : > { %670 = vst [vmem:[%s1416_s3 + $0x8] sm:$0xff] (%p632_p11), %v654_v36 }
  0xee   : > { %v585_v18 = vpop.f32.mrf.mxu2  ;;  %v595_v19 = vpop.f32.mrf.mxu3  ;;  %674 = vst [vmem:[%s1416_s3 + $0x28] sm:$0xff] (%p632_p11), %v658_v45 }
  0xef   : > { %v610_v20 = vadd.f32 %v585_v18, %v417_v14  ;;  %v614_v21 = vadd.f32 %v595_v19, %v421_v15  ;;  %v567_v22 = vpop.f32.mrf.mxu0  ;;  %v577_v23 = vpop.f32.mrf.mxu1  ;;  %677 = vst [vmem:[%s1416_s3 + $0x40] sm:$0xff] (%p632_p11), %v661_v51 }
  0xf0   : > { %v603_v24 = vadd.f32 %v567_v22, %v410_v16  ;;  %v607_v25 = vadd.f32 %v577_v23, %v414_v17  ;;  %v646_v48 = vld [vmem:[%s1416_s3 + $0x48] sm:$0xff] (%p632_p11)  ;;  %681 = vst [vmem:[%s1416_s3 + $0x60] sm:$0xff] (%p632_p11), %v665_v59 }
  0xf1   : > { %626 = vst [vmem:[%s1416_s3 + $0x50] sm:$0xff] %v610_v20  ;;  %v662_v53 = vmax.f32 (%p632_p11), %v646_v48, 0.0  ;;  %v650_v56 = vld [vmem:[%s1416_s3 + $0x68] sm:$0xff] (%p632_p11) }
  0xf2   : > { %630 = vst [vmem:[%s1416_s3 + $0x70] sm:$0xff] %v614_v21  ;;  %v639_v34 = vld [vmem:[%s1416_s3 + $0x10] sm:$0xff] (%p632_p11)  ;;  %v666_v61 = vmax.f32 (%p632_p11), %v650_v56, 0.0 }
  0xf3   : > { %619 = vst [vmem:[%s1416_s3 + $0x18] sm:$0xff] %v603_v24  ;;  %v655_v37 = vmax.f32 (%p632_p11), %v639_v34, 0.0  ;;  %v643_v42 = vld [vmem:[%s1416_s3 + $0x30] sm:$0xff] (%p632_p11) }
  0xf4   : > { %623 = vst [vmem:[%s1416_s3 + $0x38] sm:$0xff] %v607_v25  ;;  %v659_v47 = vmax.f32 (%p632_p11), %v643_v42, 0.0 }
  0xf5   : > { %671 = vst [vmem:[%s1416_s3 + $0x10] sm:$0xff] (%p632_p11), %v655_v37 }
  0xf6   : > { %v587_v28 = vpop.f32.mrf.mxu2  ;;  %v597_v29 = vpop.f32.mrf.mxu3  ;;  %636 = sbr.rel (!%p632_p11) target bundleno = 261 (0x105), region = 81  ;;  %675 = vst [vmem:[%s1416_s3 + $0x30] sm:$0xff] (%p632_p11), %v659_v47 }
  0xf7   : > { %v611_v30 = vadd.f32 %v587_v28, %v418_v26  ;;  %v615_v31 = vadd.f32 %v597_v29, %v422_v27  ;;  %678 = vst [vmem:[%s1416_s3 + $0x48] sm:$0xff] (%p632_p11), %v662_v53 }
  0xf8   : > { %v647_v50 = vld [vmem:[%s1416_s3 + $0x50] sm:$0xff] (%p632_p11)  ;;  %682 = vst [vmem:[%s1416_s3 + $0x68] sm:$0xff] (%p632_p11), %v666_v61 }
  0xf9   : > { %627 = vst [vmem:[%s1416_s3 + $0x58] sm:$0xff] %v611_v30  ;;  %v663_v55 = vmax.f32 (%p632_p11), %v647_v50, 0.0  ;;  %v651_v58 = vld [vmem:[%s1416_s3 + $0x70] sm:$0xff] (%p632_p11) }
  0xfa   : > { %631 = vst [vmem:[%s1416_s3 + $0x78] sm:$0xff] %v615_v31  ;;  %v640_v38 = vld [vmem:[%s1416_s3 + $0x18] sm:$0xff] (%p632_p11)  ;;  %v667_v62 = vmax.f32 (%p632_p11), %v651_v58, 0.0 }
  0xfb   : > { %v656_v41 = vmax.f32 %v640_v38, 0.0  ;;  %v644_v44 = vld [vmem:[%s1416_s3 + $0x38] sm:$0xff]  ;;  %679 = vst [vmem:[%s1416_s3 + $0x50] sm:$0xff] %v663_v55 }
  0xfc   : > { %v660_v49 = vmax.f32 %v644_v44, 0.0  ;;  %683 = vst [vmem:[%s1416_s3 + $0x70] sm:$0xff] %v667_v62 }
  0xfd   : > { %672 = vst [vmem:[%s1416_s3 + $0x18] sm:$0xff] %v656_v41 }
  0xfe   : > { %676 = vst [vmem:[%s1416_s3 + $0x38] sm:$0xff] %v660_v49 }
 0x100   : > { %v648_v52 = vld [vmem:[%s1416_s3 + $0x58] sm:$0xff] }
 0x101   : > { %v664_v57 = vmax.f32 %v648_v52, 0.0  ;;  %v652_v60 = vld [vmem:[%s1416_s3 + $0x78] sm:$0xff] }
 0x102   : > { %v668_v63 = vmax.f32 %v652_v60, 0.0 }
 0x103   : > { %680 = vst [vmem:[%s1416_s3 + $0x58] sm:$0xff] %v664_v57 }
 0x104   : > { %684 = vst [vmem:[%s1416_s3 + $0x78] sm:$0xff] %v668_v63 }
 0x105 PF: > { %s13_s16 = sadd.s32 1, %s995_s16   ;;  %s1417_s12 = smov %s983_s13 }
 0x106   : > { %p10_p12 = scmp.ge.s32.totalorder %s13_s16, 6   ;;  %s1418_s13 = smov %s1052_s20 }
 0x107   : > { %s1419_s14 = smov %s991_s15  ;;  %s1420_s15 = smov %s1422_s17 }
 0x108   :  { %12 = sbr.rel (!%p10_p12) target bundleno = 3 (0x3), region = 122 }

// kernel: rgcn_forward.4
= control target key start
LH: loop header
LB: loop body
LE: loop exit
PB: predicated region body
PF: predicated region fallthrough
CT: control target
= control target key end

     0   :  { %s1205_s1 = inlined_call_operand.vmem [shape: f32[128,512], index: 1, kind: input, shape index: {}]   ;;  %s1206_s0 = inlined_call_operand.vmem [shape: f32[128,128], index: 0, kind: input, shape index: {}]   ;;  %s1207_s2 = inlined_call_operand.vmem [shape: f32[128,128], index: 2, kind: input, shape index: {}]   ;;  %s1208_s3 = inlined_call_operand.vmem [shape: f32[1,128], index: 3, kind: input, shape index: {}]   ;;  %s1209_s4 = inlined_call_operand.vmem [shape: bf16[128,512], index: 4, kind: output, shape index: {0}]   ;;  %s1210_s5 = inlined_call_operand.vmem [shape: f32[128,128], index: 5, kind: output, shape index: {1}]  }
   0x1   :  { %v95_v0 = vld [vmem:[%s1205_s1 + $0x1e0] sm:$0xff]  ;;  %v97_v19 = vld [vmem:[%s1205_s1 + $0x1f0] sm:$0xff]  ;;  %v98_v20 = vld [vmem:[%s1205_s1 + $0x1f8] sm:$0xff] }
   0x2   :  { %v91_v1 = vld [vmem:[%s1205_s1 + $0x1c0] sm:$0xff]  ;;  %532 = vmatpush.msra.mxu1 %v95_v0  ;;  %533 = vmatpush.msra.mxu2 %v95_v0  ;;  %v96_v21 = vld [vmem:[%s1205_s1 + $0x1e8] sm:$0xff]  ;;  %v93_v22 = vld [vmem:[%s1205_s1 + $0x1d0] sm:$0xff] }
   0x3   :  { %534 = vmatpush.msra.mxu3 %v95_v0  ;;  %v87_v2 = vld [vmem:[%s1205_s1 + $0x1a0] sm:$0xff]  ;;  %99 = vmatpush.msra.mxu0 %v95_v0  ;;  %v94_v23 = vld [vmem:[%s1205_s1 + $0x1d8] sm:$0xff]  ;;  %v92_v24 = vld [vmem:[%s1205_s1 + $0x1c8] sm:$0xff] }
   0x4   :  { %535 = vmatpush.msra.mxu1 %v91_v1  ;;  %536 = vmatpush.msra.mxu2 %v91_v1  ;;  %v83_v3 = vld [vmem:[%s1205_s1 + $0x180] sm:$0xff]  ;;  %v89_v26 = vld [vmem:[%s1205_s1 + $0x1b0] sm:$0xff]  ;;  %v90_v27 = vld [vmem:[%s1205_s1 + $0x1b8] sm:$0xff] }
   0x5   :  { %537 = vmatpush.msra.mxu3 %v91_v1  ;;  %100 = vmatpush.msra.mxu0 %v91_v1  ;;  %v79_v4 = vld [vmem:[%s1205_s1 + $0x160] sm:$0xff]  ;;  %v88_v28 = vld [vmem:[%s1205_s1 + $0x1a8] sm:$0xff]  ;;  %v438_v29 = vld [vmem:[%s1207_s2 + $0x78] sm:$0xff] }
   0x6   :  { %538 = vmatpush.msra.mxu1 %v87_v2  ;;  %539 = vmatpush.msra.mxu2 %v87_v2  ;;  %v75_v5 = vld [vmem:[%s1205_s1 + $0x140] sm:$0xff]  ;;  %v85_v30 = vld [vmem:[%s1205_s1 + $0x190] sm:$0xff]  ;;  %v86_v31 = vld [vmem:[%s1205_s1 + $0x198] sm:$0xff] }
   0x7   :  { %540 = vmatpush.msra.mxu3 %v87_v2  ;;  %101 = vmatpush.msra.mxu0 %v87_v2  ;;  %v71_v6 = vld [vmem:[%s1205_s1 + $0x120] sm:$0xff]  ;;  %v84_v32 = vld [vmem:[%s1205_s1 + $0x188] sm:$0xff]  ;;  %v81_v36 = vld [vmem:[%s1205_s1 + $0x170] sm:$0xff] }
   0x8   :  { %541 = vmatpush.msra.mxu1 %v83_v3  ;;  %542 = vmatpush.msra.mxu2 %v83_v3  ;;  %v67_v7 = vld [vmem:[%s1205_s1 + $0x100] sm:$0xff]  ;;  %v725_v33 = vld [vmem:[%s1206_s0 + $0x48] sm:$0xff]  ;;  %v82_v37 = vld [vmem:[%s1205_s1 + $0x178] sm:$0xff] }
   0x9   :  { %543 = vmatpush.msra.mxu3 %v83_v3  ;;  %102 = vmatpush.msra.mxu0 %v83_v3  ;;  %v63_v8 = vld [vmem:[%s1205_s1 + $0xe0] sm:$0xff]  ;;  %v730_v34 = vld [vmem:[%s1206_s0 + $0x28] sm:$0xff]  ;;  %v437_v38 = vld [vmem:[%s1207_s2 + $0x70] sm:$0xff] }
   0xa   :  { %544 = vmatpush.msra.mxu1 %v79_v4  ;;  %545 = vmatpush.msra.mxu2 %v79_v4  ;;  %v59_v9 = vld [vmem:[%s1205_s1 + $0xc0] sm:$0xff]  ;;  %v735_v35 = vld [vmem:[%s1206_s0 + $0x68] sm:$0xff]  ;;  %v77_v40 = vld [vmem:[%s1205_s1 + $0x150] sm:$0xff] }
   0xb   :  { %546 = vmatpush.msra.mxu3 %v79_v4  ;;  %103 = vmatpush.msra.mxu0 %v79_v4  ;;  %v55_v10 = vld [vmem:[%s1205_s1 + $0xa0] sm:$0xff]  ;;  %v80_v39 = vld [vmem:[%s1205_s1 + $0x168] sm:$0xff]  ;;  %v78_v41 = vld [vmem:[%s1205_s1 + $0x158] sm:$0xff] }
   0xc   :  { %547 = vmatpush.msra.mxu1 %v75_v5  ;;  %548 = vmatpush.msra.mxu2 %v75_v5  ;;  %v51_v11 = vld [vmem:[%s1205_s1 + $0x80] sm:$0xff]  ;;  %v436_v42 = vld [vmem:[%s1207_s2 + $0x68] sm:$0xff]  ;;  %v73_v44 = vld [vmem:[%s1205_s1 + $0x130] sm:$0xff] }
   0xd   :  { %549 = vmatpush.msra.mxu3 %v75_v5  ;;  %104 = vmatpush.msra.mxu0 %v75_v5  ;;  %v47_v12 = vld [vmem:[%s1205_s1 + $0x60] sm:$0xff]  ;;  %v76_v43 = vld [vmem:[%s1205_s1 + $0x148] sm:$0xff]  ;;  %v74_v45 = vld [vmem:[%s1205_s1 + $0x138] sm:$0xff] }
   0xe   :  { %550 = vmatpush.msra.mxu1 %v71_v6  ;;  %551 = vmatpush.msra.mxu2 %v71_v6  ;;  %v43_v13 = vld [vmem:[%s1205_s1 + $0x40] sm:$0xff]  ;;  %v72_v47 = vld [vmem:[%s1205_s1 + $0x128] sm:$0xff]  ;;  %v69_v49 = vld [vmem:[%s1205_s1 + $0x110] sm:$0xff] }
   0xf   :  { %552 = vmatpush.msra.mxu3 %v71_v6  ;;  %105 = vmatpush.msra.mxu0 %v71_v6  ;;  %v39_v14 = vld [vmem:[%s1205_s1 + $0x20] sm:$0xff]  ;;  %v779_v48 = vld [vmem:[%s1206_s0 + $0x8] sm:$0xff]  ;;  %v70_v50 = vld [vmem:[%s1205_s1 + $0x118] sm:$0xff] }
  0x10   :  { %553 = vmatpush.msra.mxu1 %v67_v7  ;;  %554 = vmatpush.msra.mxu2 %v67_v7  ;;  %v35_v15 = vld [vmem:[%s1205_s1] sm:$0xff]  ;;  %v434_v51 = vld [vmem:[%s1207_s2 + $0x58] sm:$0xff]  ;;  %v68_v52 = vld [vmem:[%s1205_s1 + $0x108] sm:$0xff] }
  0x11   :  { %555 = vmatpush.msra.mxu3 %v67_v7  ;;  %106 = vmatpush.msra.mxu0 %v67_v7  ;;  %v662_v16 = vld [vmem:[%s1206_s0 + $0x20] sm:$0xff]  ;;  %v796_v53 = vld [vmem:[%s1206_s0 + $0x50] sm:$0xff]  ;;  %v66_v57 = vld [vmem:[%s1205_s1 + $0xf8] sm:$0xff] }
  0x12   :  { %556 = vmatpush.msra.mxu1 %v63_v8  ;;  %557 = vmatpush.msra.mxu2 %v63_v8  ;;  %v667_v17 = vld [vmem:[%s1206_s0 + $0x40] sm:$0xff]  ;;  %v802_v54 = vld [vmem:[%s1206_s0 + $0x30] sm:$0xff]  ;;  %v64_v59 = vld [vmem:[%s1205_s1 + $0xe8] sm:$0xff] }
  0x13   :  { %558 = vmatpush.msra.mxu3 %v63_v8  ;;  %107 = vmatpush.msra.mxu0 %v63_v8  ;;  %v672_v18 = vld [vmem:[%s1206_s0 + $0x60] sm:$0xff]  ;;  %v807_v55 = vld [vmem:[%s1206_s0 + $0x70] sm:$0xff]  ;;  %v62_v61 = vld [vmem:[%s1205_s1 + $0xd8] sm:$0xff] }
  0x14   :  { %559 = vmatpush.msra.mxu1 %v59_v9  ;;  %560 = vmatpush.msra.mxu2 %v59_v9  ;;  %v698_v25 = vld [vmem:[%s1206_s0] sm:$0xff]  ;;  %v65_v56 = vld [vmem:[%s1205_s1 + $0xf0] sm:$0xff]  ;;  %v432_v62 = vld [vmem:[%s1207_s2 + $0x48] sm:$0xff] }
  0x15   :  { %561 = vmatpush.msra.mxu3 %v59_v9  ;;  %108 = vmatpush.msra.mxu0 %v59_v9  ;;  %v435_v46 = vld [vmem:[%s1207_s2 + $0x60] sm:$0xff]  ;;  %v433_v58 = vld [vmem:[%s1207_s2 + $0x50] sm:$0xff]  ;;  %v60_v63 = vld [vmem:[%s1205_s1 + $0xc8] sm:$0xff] }
  0x16   :  { %562 = vmatpush.msra.mxu1 %v55_v10  ;;  %563 = vmatpush.msra.mxu2 %v55_v10  ;;  %v61_v60 = vld [vmem:[%s1205_s1 + $0xd0] sm:$0xff]  ;;  %v58_v1 = vld [vmem:[%s1205_s1 + $0xb8] sm:$0xff]  ;;  %v431_v2 = vld [vmem:[%s1207_s2 + $0x40] sm:$0xff] }
  0x17   :  { %564 = vmatpush.msra.mxu3 %v55_v10  ;;  %109 = vmatpush.msra.mxu0 %v55_v10  ;;  %v57_v0 = vld [vmem:[%s1205_s1 + $0xb0] sm:$0xff]  ;;  %v56_v3 = vld [vmem:[%s1205_s1 + $0xa8] sm:$0xff]  ;;  %v54_v6 = vld [vmem:[%s1205_s1 + $0x98] sm:$0xff] }
  0x18   :  { %565 = vmatpush.msra.mxu1 %v51_v11  ;;  %566 = vmatpush.msra.mxu2 %v51_v11  ;;  %v851_v4 = vld [vmem:[%s1206_s0 + $0x10] sm:$0xff]  ;;  %v430_v7 = vld [vmem:[%s1207_s2 + $0x38] sm:$0xff]  ;;  %v52_v8 = vld [vmem:[%s1205_s1 + $0x88] sm:$0xff] }
  0x19   :  { %567 = vmatpush.msra.mxu3 %v51_v11  ;;  %110 = vmatpush.msra.mxu0 %v51_v11  ;;  %v53_v5 = vld [vmem:[%s1205_s1 + $0x90] sm:$0xff]  ;;  %v868_v9 = vld [vmem:[%s1206_s0 + $0x58] sm:$0xff] }
  0x1a   :  { %568 = vmatpush.msra.mxu1 %v47_v12  ;;  %569 = vmatpush.msra.mxu2 %v47_v12  ;;  %v874_v10 = vld [vmem:[%s1206_s0 + $0x38] sm:$0xff] }
  0x1b   :  { %570 = vmatpush.msra.mxu3 %v47_v12  ;;  %111 = vmatpush.msra.mxu0 %v47_v12  ;;  %v879_v11 = vld [vmem:[%s1206_s0 + $0x78] sm:$0xff]  ;;  %v49_v12 = vld [vmem:[%s1205_s1 + $0x70] sm:$0xff] }
  0x1c   :  { %571 = vmatpush.msra.mxu1 %v43_v13  ;;  %572 = vmatpush.msra.mxu2 %v43_v13 }
  0x1d   :  { %573 = vmatpush.msra.mxu3 %v43_v13  ;;  %112 = vmatpush.msra.mxu0 %v43_v13  ;;  %v50_v13 = vld [vmem:[%s1205_s1 + $0x78] sm:$0xff] }
  0x1e   :  { %574 = vmatpush.msra.mxu1 %v39_v14  ;;  %575 = vmatpush.msra.mxu2 %v39_v14 }
  0x1f   :  { %576 = vmatpush.msra.mxu3 %v39_v14  ;;  %113 = vmatpush.msra.mxu0 %v39_v14  ;;  %v429_v14 = vld [vmem:[%s1207_s2 + $0x30] sm:$0xff] }
  0x20   :  { %577 = vmatpush.msra.mxu1 %v35_v15  ;;  %578 = vmatpush.msra.mxu2 %v35_v15 }
  0x21   :  { %579 = vmatpush.msra.mxu3 %v35_v15  ;;  %127 = vmatmul.f32.vlgmr.msra.gmra.mxu1 %v662_v16 }
  0x22   :  { %139 = vmatmul.f32.vlgmr.msra.gmra.mxu2 %v667_v17  ;;  %151 = vmatmul.f32.vlgmr.msra.gmra.mxu3 %v672_v18 }
  0x23   :  { %229 = vmatpush.msrb.mxu2 %v97_v19  ;;  %294 = vmatpush.msrb.mxu3 %v98_v20  ;;  %v45_v19 = vld [vmem:[%s1205_s1 + $0x50] sm:$0xff]  ;;  %v46_v20 = vld [vmem:[%s1205_s1 + $0x58] sm:$0xff] }
  0x24   :  { %164 = vmatpush.msrb.mxu1 %v96_v21  ;;  %114 = vmatpush.msra.mxu0 %v35_v15  ;;  %v48_v15 = vld [vmem:[%s1205_s1 + $0x68] sm:$0xff] }
  0x25   :  { %230 = vmatpush.msrb.mxu2 %v93_v22  ;;  %295 = vmatpush.msrb.mxu3 %v94_v23  ;;  %v428_v21 = vld [vmem:[%s1207_s2 + $0x28] sm:$0xff]  ;;  %v41_v23 = vld [vmem:[%s1205_s1 + $0x30] sm:$0xff] }
  0x26   :  { %165 = vmatpush.msrb.mxu1 %v92_v24  ;;  %115 = vmatmul.f32.vlgmr.msra.gmra.mxu0 %v698_v25  ;;  %v44_v22 = vld [vmem:[%s1205_s1 + $0x48] sm:$0xff]  ;;  %v42_v24 = vld [vmem:[%s1205_s1 + $0x38] sm:$0xff] }
  0x27   :  { %231 = vmatpush.msrb.mxu2 %v89_v26  ;;  %296 = vmatpush.msrb.mxu3 %v90_v27  ;;  %v427_v26 = vld [vmem:[%s1207_s2 + $0x20] sm:$0xff]  ;;  %v40_v27 = vld [vmem:[%s1205_s1 + $0x28] sm:$0xff] }
  0x28   :  { %166 = vmatpush.msrb.mxu1 %v88_v28  ;;  %443 = vmatpush.msrb.mxu0 %v438_v29  ;;  %v22_v28 = vld [vmem:[%s1206_s0 + $0x18] sm:$0xff]  ;;  %v37_v29 = vld [vmem:[%s1205_s1 + $0x10] sm:$0xff] }
  0x29   :  { %232 = vmatpush.msrb.mxu2 %v85_v30  ;;  %297 = vmatpush.msrb.mxu3 %v86_v31  ;;  %v38_v30 = vld [vmem:[%s1205_s1 + $0x18] sm:$0xff] }
  0x2a   :  { %167 = vmatpush.msrb.mxu1 %v84_v32  ;;  %142 = vmatmul.f32.gmra.mxu2 %v725_v33  ;;  %v426_v31 = vld [vmem:[%s1207_s2 + $0x18] sm:$0xff]  ;;  %v36_v32 = vld [vmem:[%s1205_s1 + $0x8] sm:$0xff] }
  0x2b   :  { %130 = vmatmul.f32.gmra.mxu1 %v730_v34  ;;  %154 = vmatmul.f32.gmra.mxu3 %v735_v35 }
  0x2c   :  { %233 = vmatpush.msrb.mxu2 %v81_v36  ;;  %298 = vmatpush.msrb.mxu3 %v82_v37  ;;  %v425_v36 = vld [vmem:[%s1207_s2 + $0x10] sm:$0xff]  ;;  %v424_v37 = vld [vmem:[%s1207_s2 + $0x8] sm:$0xff] }
  0x2d   :  { %444 = vmatpush.msrb.mxu0 %v437_v38  ;;  %168 = vmatpush.msrb.mxu1 %v80_v39  ;;  %v423_v38 = vld [vmem:[%s1207_s2] sm:$0xff] }
  0x2e   :  { %234 = vmatpush.msrb.mxu2 %v77_v40  ;;  %299 = vmatpush.msrb.mxu3 %v78_v41 }
  0x2f   :  { %445 = vmatpush.msrb.mxu0 %v436_v42  ;;  %169 = vmatpush.msrb.mxu1 %v76_v43 }
  0x30   :  { %235 = vmatpush.msrb.mxu2 %v73_v44  ;;  %300 = vmatpush.msrb.mxu3 %v74_v45 }
  0x31   :  { %446 = vmatpush.msrb.mxu0 %v435_v46  ;;  %170 = vmatpush.msrb.mxu1 %v72_v47 }
  0x32   :  { %118 = vmatmul.f32.gmra.mxu0 %v779_v48  ;;  %236 = vmatpush.msrb.mxu2 %v69_v49 }
  0x33   :  { %301 = vmatpush.msrb.mxu3 %v70_v50  ;;  %447 = vmatpush.msrb.mxu0 %v434_v51  ;;  %v1034_v50 = vld [vmem:[%s1208_s3] ss:$0 sm:$0xff] }
  0x34   :  { %171 = vmatpush.msrb.mxu1 %v68_v52  ;;  %145 = vmatmul.f32.gmra.mxu2 %v796_v53 }
  0x35   :  { %133 = vmatmul.f32.gmra.mxu1 %v802_v54  ;;  %157 = vmatmul.f32.gmra.mxu3 %v807_v55 }
  0x36   :  { %237 = vmatpush.msrb.mxu2 %v65_v56  ;;  %302 = vmatpush.msrb.mxu3 %v66_v57 }
  0x37   :  { %448 = vmatpush.msrb.mxu0 %v433_v58  ;;  %172 = vmatpush.msrb.mxu1 %v64_v59 }
  0x38   :  { %238 = vmatpush.msrb.mxu2 %v61_v60  ;;  %303 = vmatpush.msrb.mxu3 %v62_v61 }
  0x39   :  { %449 = vmatpush.msrb.mxu0 %v432_v62  ;;  %173 = vmatpush.msrb.mxu1 %v60_v63 }
  0x3a   :  { %239 = vmatpush.msrb.mxu2 %v57_v0  ;;  %304 = vmatpush.msrb.mxu3 %v58_v1 }
  0x3b   :  { %450 = vmatpush.msrb.mxu0 %v431_v2  ;;  %174 = vmatpush.msrb.mxu1 %v56_v3 }
  0x3c   :  { %121 = vmatmul.f32.gmra.mxu0 %v851_v4  ;;  %240 = vmatpush.msrb.mxu2 %v53_v5 }
  0x3d   :  { %305 = vmatpush.msrb.mxu3 %v54_v6  ;;  %451 = vmatpush.msrb.mxu0 %v430_v7 }
  0x3e   :  { %175 = vmatpush.msrb.mxu1 %v52_v8  ;;  %148 = vmatmul.f32.gmra.mxu2 %v868_v9 }
  0x3f   :  { %136 = vmatmul.f32.gmra.mxu1 %v874_v10  ;;  %160 = vmatmul.f32.gmra.mxu3 %v879_v11 }
  0x40   :  { %241 = vmatpush.msrb.mxu2 %v49_v12  ;;  %306 = vmatpush.msrb.mxu3 %v50_v13 }
  0x41   :  { %452 = vmatpush.msrb.mxu0 %v429_v14  ;;  %176 = vmatpush.msrb.mxu1 %v48_v15 }
  0x42   :  { %242 = vmatpush.msrb.mxu2 %v45_v19  ;;  %307 = vmatpush.msrb.mxu3 %v46_v20 }
  0x43   :  { %453 = vmatpush.msrb.mxu0 %v428_v21  ;;  %177 = vmatpush.msrb.mxu1 %v44_v22 }
  0x44   :  { %243 = vmatpush.msrb.mxu2 %v41_v23  ;;  %308 = vmatpush.msrb.mxu3 %v42_v24 }
  0x45   :  { %454 = vmatpush.msrb.mxu0 %v427_v26  ;;  %178 = vmatpush.msrb.mxu1 %v40_v27 }
  0x46   :  { %124 = vmatmul.f32.gmra.mxu0 %v22_v28  ;;  %244 = vmatpush.msrb.mxu2 %v37_v29 }
  0x47   :  { %309 = vmatpush.msrb.mxu3 %v38_v30  ;;  %455 = vmatpush.msrb.mxu0 %v426_v31 }
  0x48   :  { %179 = vmatpush.msrb.mxu1 %v36_v32  ;;  %245 = vmatmul.f32.vlgmr.msrb.gmra.mxu2 %v698_v25 }
  0x49   :  { %180 = vmatmul.f32.vlgmr.msrb.gmra.mxu1 %v698_v25  ;;  %310 = vmatmul.f32.vlgmr.msrb.gmra.mxu3 %v698_v25 }
  0x4a   :  { %456 = vmatpush.msrb.mxu0 %v425_v36 }
  0x4c   :  { %457 = vmatpush.msrb.mxu0 %v424_v37 }
  0x4e   :  { %458 = vmatpush.msrb.mxu0 %v423_v38 }
  0x4f   :  { %459 = vmatmul.f32.vlgmr.msrb.gmra.mxu0 %v698_v25 }
  0x50   :  { %248 = vmatmul.f32.gmra.mxu2 %v779_v48 }
  0x51   :  { %183 = vmatmul.f32.gmra.mxu1 %v779_v48  ;;  %313 = vmatmul.f32.gmra.mxu3 %v779_v48 }
  0x57   :  { %462 = vmatmul.f32.gmra.mxu0 %v779_v48 }
  0x58   :  { %251 = vmatmul.f32.gmra.mxu2 %v851_v4 }
  0x59   :  { %186 = vmatmul.f32.gmra.mxu1 %v851_v4  ;;  %316 = vmatmul.f32.gmra.mxu3 %v851_v4 }
  0x5f   :  { %465 = vmatmul.f32.gmra.mxu0 %v851_v4 }
  0x60   :  { %254 = vmatmul.f32.gmra.mxu2 %v22_v28 }
  0x61   :  { %189 = vmatmul.f32.gmra.mxu1 %v22_v28  ;;  %319 = vmatmul.f32.gmra.mxu3 %v22_v28 }
  0x67   :  { %468 = vmatmul.f32.gmra.mxu0 %v22_v28 }
  0x68   :  { %257 = vmatmul.f32.gmra.mxu2 %v662_v16 }
  0x69   :  { %192 = vmatmul.f32.gmra.mxu1 %v662_v16  ;;  %322 = vmatmul.f32.gmra.mxu3 %v662_v16 }
  0x6f   :  { %471 = vmatmul.f32.gmra.mxu0 %v662_v16 }
  0x70   :  { %260 = vmatmul.f32.gmra.mxu2 %v730_v34 }
  0x71   :  { %195 = vmatmul.f32.gmra.mxu1 %v730_v34  ;;  %325 = vmatmul.f32.gmra.mxu3 %v730_v34 }
  0x77   :  { %474 = vmatmul.f32.gmra.mxu0 %v730_v34 }
  0x78   :  { %263 = vmatmul.f32.gmra.mxu2 %v802_v54 }
  0x79   :  { %198 = vmatmul.f32.gmra.mxu1 %v802_v54  ;;  %328 = vmatmul.f32.gmra.mxu3 %v802_v54 }
  0x7f   :  { %477 = vmatmul.f32.gmra.mxu0 %v802_v54 }
  0x80   :  { %266 = vmatmul.f32.gmra.mxu2 %v874_v10 }
  0x81   :  { %201 = vmatmul.f32.gmra.mxu1 %v874_v10  ;;  %331 = vmatmul.f32.gmra.mxu3 %v874_v10 }
  0x87   :  { %480 = vmatmul.f32.gmra.mxu0 %v874_v10 }
  0x88   :  { %269 = vmatmul.f32.gmra.mxu2 %v667_v17 }
  0x89   :  { %204 = vmatmul.f32.gmra.mxu1 %v667_v17  ;;  %334 = vmatmul.f32.gmra.mxu3 %v667_v17 }
  0x8f   :  { %483 = vmatmul.f32.gmra.mxu0 %v667_v17 }
  0x90   :  { %272 = vmatmul.f32.gmra.mxu2 %v725_v33 }
  0x91   :  { %207 = vmatmul.f32.gmra.mxu1 %v725_v33  ;;  %337 = vmatmul.f32.gmra.mxu3 %v725_v33 }
  0x97   :  { %486 = vmatmul.f32.gmra.mxu0 %v725_v33 }
  0x98   :  { %275 = vmatmul.f32.gmra.mxu2 %v796_v53 }
  0x99   :  { %210 = vmatmul.f32.gmra.mxu1 %v796_v53  ;;  %340 = vmatmul.f32.gmra.mxu3 %v796_v53 }
  0x9e   :  { %v983_v16 = vpop.f32.mrf.mxu1 }
  0x9f   :  { %489 = vmatmul.f32.gmra.mxu0 %v796_v53 }
  0xa0   :  { %278 = vmatmul.f32.gmra.mxu2 %v868_v9 }
  0xa1   :  { %213 = vmatmul.f32.gmra.mxu1 %v868_v9  ;;  %343 = vmatmul.f32.gmra.mxu3 %v868_v9 }
  0xa3   :  { %v116_v17 = vpop.f32.mrf.mxu0 }
  0xa5   :  { %v989_v25 = vpop.f32.mrf.mxu2  ;;  %v991_v33 = vpop.f32.mrf.mxu3 }
  0xa7   :  { %492 = vmatmul.f32.gmra.mxu0 %v868_v9 }
  0xa8   :  { %281 = vmatmul.f32.gmra.mxu2 %v672_v18  ;;  %v995_v34 = vpop.f32.mrf.mxu1 }
  0xa9   :  { %216 = vmatmul.f32.gmra.mxu1 %v672_v18  ;;  %346 = vmatmul.f32.gmra.mxu3 %v672_v18 }
  0xad   :  { %v999_v39 = vpop.f32.mrf.mxu2 }
  0xae   :  { %v1001_v40 = vpop.f32.mrf.mxu3 }
  0xaf   :  { %495 = vmatmul.f32.gmra.mxu0 %v672_v18  ;;  %v119_v41 = vpop.f32.mrf.mxu0 }
  0xb0   :  { %284 = vmatmul.f32.gmra.mxu2 %v735_v35 }
  0xb1   :  { %219 = vmatmul.f32.gmra.mxu1 %v735_v35  ;;  %349 = vmatmul.f32.gmra.mxu3 %v735_v35 }
  0xb2   :  { %v1007_v42 = vpop.f32.mrf.mxu1 }
  0xb7   :  { %498 = vmatmul.f32.gmra.mxu0 %v735_v35  ;;  %v1010_v43 = vpop.f32.mrf.mxu2 }
  0xb8   :  { %287 = vmatmul.f32.gmra.mxu2 %v807_v55  ;;  %v1013_v44 = vpop.f32.mrf.mxu3 }
  0xb9   :  { %222 = vmatmul.f32.gmra.mxu1 %v807_v55  ;;  %352 = vmatmul.f32.gmra.mxu3 %v807_v55  ;;  %v122_v18 = vpop.f32.mrf.mxu0 }
  0xbc   :  { %v1017_v45 = vpop.f32.mrf.mxu1 }
  0xbf   :  { %501 = vmatmul.f32.gmra.mxu0 %v807_v55 }
  0xc0   :  { %290 = vmatmul.f32.gmra.mxu2 %v879_v11 }
  0xc1   :  { %225 = vmatmul.f32.gmra.mxu1 %v879_v11  ;;  %355 = vmatmul.f32.gmra.mxu3 %v879_v11  ;;  %v1023_v35 = vpop.f32.mrf.mxu2 }
  0xc2   :  { %v1025_v46 = vpop.f32.mrf.mxu3 }
  0xc3   :  { %v125_v47 = vpop.f32.mrf.mxu0 }
  0xc6   :  { %v181_v48 = vpop.f32.mrf.mxu1 }
  0xc7   :  { %v359_v49 = vpack.c.bf16 %v181_v48, %v116_v17  ;;  %504 = vmatmul.f32.gmra.mxu0 %v879_v11 }
  0xc9   :  { %391 = vst [vmem:[%s1209_s4] sm:$0xff] %v359_v49 }
  0xcb   :  { %v246_v51 = vpop.f32.mrf.mxu2 }
  0xcc   :  { %v311_v52 = vpop.f32.mrf.mxu3  ;;  %v460_v53 = vpop.f32.mrf.mxu0 }
  0xcd   :  { %v360_v54 = vpack.c.bf16 %v311_v52, %v246_v51  ;;  %v461_v55 = vadd.f32 %v1034_v50, %v460_v53 }
  0xce   :  { %v184_v56 = vpop.f32.mrf.mxu1 }
  0xcf   :  { %392 = vst [vmem:[%s1209_s4 + $0x8] sm:$0xff] %v360_v54  ;;  %v361_v57 = vpack.c.bf16 %v184_v56, %v119_v41 }
  0xd0   :  { %508 = vst [vmem:[%s1210_s5] sm:$0xff] %v461_v55 }
  0xd1   :  { %393 = vst [vmem:[%s1209_s4 + $0x10] sm:$0xff] %v361_v57 }
  0xd3   :  { %v249_v58 = vpop.f32.mrf.mxu2 }
  0xd4   :  { %v314_v59 = vpop.f32.mrf.mxu3  ;;  %v463_v60 = vpop.f32.mrf.mxu0 }
  0xd5   :  { %v362_v61 = vpack.c.bf16 %v314_v59, %v249_v58  ;;  %v464_v62 = vadd.f32 %v1034_v50, %v463_v60 }
  0xd6   :  { %v187_v63 = vpop.f32.mrf.mxu1 }
  0xd7   :  { %394 = vst [vmem:[%s1209_s4 + $0x18] sm:$0xff] %v362_v61  ;;  %v363_v0 = vpack.c.bf16 %v187_v63, %v122_v18 }
  0xd8   :  { %509 = vst [vmem:[%s1210_s5 + $0x8] sm:$0xff] %v464_v62 }
  0xd9   :  { %395 = vst [vmem:[%s1209_s4 + $0x20] sm:$0xff] %v363_v0 }
  0xdb   :  { %v252_v1 = vpop.f32.mrf.mxu2 }
  0xdc   :  { %v317_v2 = vpop.f32.mrf.mxu3  ;;  %v466_v3 = vpop.f32.mrf.mxu0 }
  0xdd   :  { %v364_v4 = vpack.c.bf16 %v317_v2, %v252_v1  ;;  %v467_v5 = vadd.f32 %v1034_v50, %v466_v3 }
  0xde   :  { %v190_v6 = vpop.f32.mrf.mxu1 }
  0xdf   :  { %396 = vst [vmem:[%s1209_s4 + $0x28] sm:$0xff] %v364_v4  ;;  %v365_v7 = vpack.c.bf16 %v190_v6, %v125_v47 }
  0xe0   :  { %510 = vst [vmem:[%s1210_s5 + $0x10] sm:$0xff] %v467_v5 }
  0xe1   :  { %397 = vst [vmem:[%s1209_s4 + $0x30] sm:$0xff] %v365_v7 }
  0xe3   :  { %v255_v8 = vpop.f32.mrf.mxu2 }
  0xe4   :  { %v320_v9 = vpop.f32.mrf.mxu3  ;;  %v469_v10 = vpop.f32.mrf.mxu0 }
  0xe5   :  { %v366_v11 = vpack.c.bf16 %v320_v9, %v255_v8  ;;  %v470_v12 = vadd.f32 %v1034_v50, %v469_v10 }
  0xe6   :  { %v193_v13 = vpop.f32.mrf.mxu1 }
  0xe7   :  { %398 = vst [vmem:[%s1209_s4 + $0x38] sm:$0xff] %v366_v11  ;;  %v367_v14 = vpack.c.bf16 %v193_v13, %v983_v16 }
  0xe8   :  { %511 = vst [vmem:[%s1210_s5 + $0x18] sm:$0xff] %v470_v12 }
  0xe9   :  { %399 = vst [vmem:[%s1209_s4 + $0x40] sm:$0xff] %v367_v14 }
  0xeb   :  { %v258_v15 = vpop.f32.mrf.mxu2 }
  0xec   :  { %v323_v19 = vpop.f32.mrf.mxu3  ;;  %v472_v20 = vpop.f32.mrf.mxu0 }
  0xed   :  { %v368_v21 = vpack.c.bf16 %v323_v19, %v258_v15  ;;  %v473_v22 = vadd.f32 %v1034_v50, %v472_v20 }
  0xee   :  { %v196_v23 = vpop.f32.mrf.mxu1 }
  0xef   :  { %400 = vst [vmem:[%s1209_s4 + $0x48] sm:$0xff] %v368_v21  ;;  %v369_v24 = vpack.c.bf16 %v196_v23, %v995_v34 }
  0xf0   :  { %512 = vst [vmem:[%s1210_s5 + $0x20] sm:$0xff] %v473_v22 }
  0xf1   :  { %401 = vst [vmem:[%s1209_s4 + $0x50] sm:$0xff] %v369_v24 }
  0xf3   :  { %v261_v26 = vpop.f32.mrf.mxu2 }
  0xf4   :  { %v326_v27 = vpop.f32.mrf.mxu3  ;;  %v475_v28 = vpop.f32.mrf.mxu0 }
  0xf5   :  { %v370_v29 = vpack.c.bf16 %v326_v27, %v261_v26  ;;  %v476_v30 = vadd.f32 %v1034_v50, %v475_v28 }
  0xf6   :  { %v199_v31 = vpop.f32.mrf.mxu1 }
  0xf7   :  { %402 = vst [vmem:[%s1209_s4 + $0x58] sm:$0xff] %v370_v29  ;;  %v371_v32 = vpack.c.bf16 %v199_v31, %v1007_v42 }
  0xf8   :  { %513 = vst [vmem:[%s1210_s5 + $0x28] sm:$0xff] %v476_v30 }
  0xf9   :  { %403 = vst [vmem:[%s1209_s4 + $0x60] sm:$0xff] %v371_v32 }
  0xfb   :  { %v264_v36 = vpop.f32.mrf.mxu2 }
  0xfc   :  { %v329_v37 = vpop.f32.mrf.mxu3  ;;  %v478_v38 = vpop.f32.mrf.mxu0 }
  0xfd   :  { %v372_v16 = vpack.c.bf16 %v329_v37, %v264_v36  ;;  %v479_v17 = vadd.f32 %v1034_v50, %v478_v38 }
  0xfe   :  { %v202_v34 = vpop.f32.mrf.mxu1 }
  0xff   :  { %404 = vst [vmem:[%s1209_s4 + $0x68] sm:$0xff] %v372_v16  ;;  %v373_v41 = vpack.c.bf16 %v202_v34, %v1017_v45 }
 0x100   :  { %514 = vst [vmem:[%s1210_s5 + $0x30] sm:$0xff] %v479_v17 }
 0x101   :  { %405 = vst [vmem:[%s1209_s4 + $0x70] sm:$0xff] %v373_v41 }
 0x103   :  { %v267_v42 = vpop.f32.mrf.mxu2 }
 0x104   :  { %v332_v18 = vpop.f32.mrf.mxu3  ;;  %v481_v47 = vpop.f32.mrf.mxu0 }
 0x105   :  { %v374_v48 = vpack.c.bf16 %v332_v18, %v267_v42  ;;  %v482_v49 = vadd.f32 %v1034_v50, %v481_v47 }
 0x106   :  { %v205_v51 = vpop.f32.mrf.mxu1 }
 0x107   :  { %406 = vst [vmem:[%s1209_s4 + $0x78] sm:$0xff] %v374_v48  ;;  %v375_v45 = vpack.c.bf16 %v205_v51, %v989_v25 }
 0x108   :  { %515 = vst [vmem:[%s1210_s5 + $0x38] sm:$0xff] %v482_v49 }
 0x109   :  { %407 = vst [vmem:[%s1209_s4 + $0x80] sm:$0xff] %v375_v45 }
 0x10b   :  { %v270_v52 = vpop.f32.mrf.mxu2 }
 0x10c   :  { %v335_v53 = vpop.f32.mrf.mxu3  ;;  %v484_v54 = vpop.f32.mrf.mxu0 }
 0x10d   :  { %v376_v55 = vpack.c.bf16 %v335_v53, %v270_v52  ;;  %v485_v56 = vadd.f32 %v1034_v50, %v484_v54 }
 0x10e   :  { %v208_v57 = vpop.f32.mrf.mxu1 }
 0x10f   :  { %408 = vst [vmem:[%s1209_s4 + $0x88] sm:$0xff] %v376_v55  ;;  %v377_v25 = vpack.c.bf16 %v208_v57, %v999_v39 }
 0x110   :  { %516 = vst [vmem:[%s1210_s5 + $0x40] sm:$0xff] %v485_v56 }
 0x111   :  { %409 = vst [vmem:[%s1209_s4 + $0x90] sm:$0xff] %v377_v25 }
 0x113   :  { %v273_v58 = vpop.f32.mrf.mxu2 }
 0x114   :  { %v338_v59 = vpop.f32.mrf.mxu3  ;;  %v487_v60 = vpop.f32.mrf.mxu0 }
 0x115   :  { %v378_v61 = vpack.c.bf16 %v338_v59, %v273_v58  ;;  %v488_v62 = vadd.f32 %v1034_v50, %v487_v60 }
 0x116   :  { %v211_v63 = vpop.f32.mrf.mxu1 }
 0x117   :  { %410 = vst [vmem:[%s1209_s4 + $0x98] sm:$0xff] %v378_v61  ;;  %v379_v39 = vpack.c.bf16 %v211_v63, %v1010_v43 }
 0x118   :  { %517 = vst [vmem:[%s1210_s5 + $0x48] sm:$0xff] %v488_v62 }
 0x119   :  { %411 = vst [vmem:[%s1209_s4 + $0xa0] sm:$0xff] %v379_v39 }
 0x11b   :  { %v276_v0 = vpop.f32.mrf.mxu2 }
 0x11c   :  { %v341_v1 = vpop.f32.mrf.mxu3  ;;  %v490_v2 = vpop.f32.mrf.mxu0 }
 0x11d   :  { %v380_v3 = vpack.c.bf16 %v341_v1, %v276_v0  ;;  %v491_v4 = vadd.f32 %v1034_v50, %v490_v2 }
 0x11e   :  { %v214_v5 = vpop.f32.mrf.mxu1 }
 0x11f   :  { %412 = vst [vmem:[%s1209_s4 + $0xa8] sm:$0xff] %v380_v3  ;;  %v381_v43 = vpack.c.bf16 %v214_v5, %v1023_v35 }
 0x120   :  { %518 = vst [vmem:[%s1210_s5 + $0x50] sm:$0xff] %v491_v4 }
 0x121   :  { %413 = vst [vmem:[%s1209_s4 + $0xb0] sm:$0xff] %v381_v43 }
 0x123   :  { %v279_v6 = vpop.f32.mrf.mxu2 }
 0x124   :  { %v344_v7 = vpop.f32.mrf.mxu3  ;;  %v493_v8 = vpop.f32.mrf.mxu0 }
 0x125   :  { %v382_v9 = vpack.c.bf16 %v344_v7, %v279_v6  ;;  %v494_v10 = vadd.f32 %v1034_v50, %v493_v8 }
 0x126   :  { %v217_v11 = vpop.f32.mrf.mxu1 }
 0x127   :  { %414 = vst [vmem:[%s1209_s4 + $0xb8] sm:$0xff] %v382_v9  ;;  %v383_v35 = vpack.c.bf16 %v217_v11, %v991_v33 }
 0x128   :  { %519 = vst [vmem:[%s1210_s5 + $0x58] sm:$0xff] %v494_v10 }
 0x129   :  { %415 = vst [vmem:[%s1209_s4 + $0xc0] sm:$0xff] %v383_v35 }
 0x12b   :  { %v282_v12 = vpop.f32.mrf.mxu2 }
 0x12c   :  { %v347_v13 = vpop.f32.mrf.mxu3  ;;  %v496_v14 = vpop.f32.mrf.mxu0 }
 0x12d   :  { %v384_v15 = vpack.c.bf16 %v347_v13, %v282_v12  ;;  %v497_v19 = vadd.f32 %v1034_v50, %v496_v14 }
 0x12e   :  { %v220_v20 = vpop.f32.mrf.mxu1 }
 0x12f   :  { %416 = vst [vmem:[%s1209_s4 + $0xc8] sm:$0xff] %v384_v15  ;;  %v385_v33 = vpack.c.bf16 %v220_v20, %v1001_v40 }
 0x130   :  { %520 = vst [vmem:[%s1210_s5 + $0x60] sm:$0xff] %v497_v19 }
 0x131   :  { %417 = vst [vmem:[%s1209_s4 + $0xd0] sm:$0xff] %v385_v33 }
 0x133   :  { %v285_v21 = vpop.f32.mrf.mxu2 }
 0x134   :  { %v350_v22 = vpop.f32.mrf.mxu3  ;;  %v499_v23 = vpop.f32.mrf.mxu0 }
 0x135   :  { %v386_v24 = vpack.c.bf16 %v350_v22, %v285_v21  ;;  %v500_v26 = vadd.f32 %v1034_v50, %v499_v23 }
 0x136   :  { %v223_v27 = vpop.f32.mrf.mxu1 }
 0x137   :  { %418 = vst [vmem:[%s1209_s4 + $0xd8] sm:$0xff] %v386_v24  ;;  %v387_v40 = vpack.c.bf16 %v223_v27, %v1013_v44 }
 0x138   :  { %521 = vst [vmem:[%s1210_s5 + $0x68] sm:$0xff] %v500_v26 }
 0x139   :  { %419 = vst [vmem:[%s1209_s4 + $0xe0] sm:$0xff] %v387_v40 }
 0x13b   :  { %v288_v28 = vpop.f32.mrf.mxu2 }
 0x13c   :  { %v353_v29 = vpop.f32.mrf.mxu3  ;;  %v502_v30 = vpop.f32.mrf.mxu0 }
 0x13d   :  { %v388_v31 = vpack.c.bf16 %v353_v29, %v288_v28  ;;  %v503_v32 = vadd.f32 %v1034_v50, %v502_v30 }
 0x13e   :  { %v226_v36 = vpop.f32.mrf.mxu1 }
 0x13f   :  { %420 = vst [vmem:[%s1209_s4 + $0xe8] sm:$0xff] %v388_v31  ;;  %v389_v44 = vpack.c.bf16 %v226_v36, %v1025_v46 }
 0x140   :  { %522 = vst [vmem:[%s1210_s5 + $0x70] sm:$0xff] %v503_v32 }
 0x141   :  { %421 = vst [vmem:[%s1209_s4 + $0xf0] sm:$0xff] %v389_v44 }
 0x143   :  { %v291_v37 = vpop.f32.mrf.mxu2 }
 0x144   :  { %v356_v38 = vpop.f32.mrf.mxu3  ;;  %v505_v16 = vpop.f32.mrf.mxu0 }
 0x145   :  { %v390_v17 = vpack.c.bf16 %v356_v38, %v291_v37  ;;  %v506_v34 = vadd.f32 %v1034_v50, %v505_v16 }
 0x147   :  { %422 = vst [vmem:[%s1209_s4 + $0xf8] sm:$0xff] %v390_v17 }
 0x148   :  { %523 = vst [vmem:[%s1210_s5 + $0x78] sm:$0xff] %v506_v34 }

</bundles_post_ra>
